<compile_context>
chip_gen: v7x
topology: tpu7x:2x2x1
jax: 0.10.0
libtpu: 0.0.40
codegen_flags: <defaults>
</compile_context>

<pallas_src>
import functools

import jax
import jax.numpy as jnp
from jax.experimental import pallas as pl
from jax.experimental.pallas import tpu as pltpu

F32 = jnp.float32
MM = jnp.bfloat16       # MXU operand dtype (f32 accumulation); elementwise math stays f32
BN_EPS = 1e-5


# ---------------------------------------------------------------------------
# Parameter init (deterministic, synthetic, torch-like structure)
# ---------------------------------------------------------------------------
def init_params(key, cfg):
    E = cfg["smiles_embedding_size"]
    A = cfg["smiles_attention_size"]
    filters = cfg["filters"]
    kernels = [k[0] for k in cfg["kernel_sizes"]]
    heads = cfg["multiheads"]
    smiles_hidden = [E] + filters
    hidden_sizes = ([heads[0] * E + sum(h * f for h, f in zip(heads[1:], filters))]
                    + cfg["stacked_hidden_sizes"])

    def nrm(k, shape, scale=0.1):
        return (scale * jax.random.normal(k, shape)).astype(F32)

    def bn_init(dim):
        return dict(gamma=jnp.ones((1, dim), F32), beta=jnp.zeros((1, dim), F32),
                    mean=jnp.zeros((1, dim), F32), var=jnp.ones((1, dim), F32))

    keys = iter(jax.random.split(key, 64))
    p = {}
    p["embedding"] = nrm(next(keys), (cfg["smiles_vocabulary_size"], E), 1.0)

    p["convs"] = []
    for K, F in zip(kernels, filters):
        p["convs"].append(dict(w=nrm(next(keys), (K, E, F)),
                               b=nrm(next(keys), (1, F)), **bn_init(F)))

    p["attn"] = []
    for layer in range(len(heads)):
        H = smiles_hidden[layer]
        p["attn"].append(dict(wp=nrm(next(keys), (H, heads[layer] * A)),
                              bp=nrm(next(keys), (1, heads[layer] * A)),
                              v=nrm(next(keys), (heads[layer], A))))

    p["bn"] = bn_init(hidden_sizes[0])

    p["dense"] = []
    for i in range(len(hidden_sizes) - 1):
        p["dense"].append(dict(w=nrm(next(keys), (hidden_sizes[i], hidden_sizes[i + 1])),
                               b=nrm(next(keys), (1, hidden_sizes[i + 1])),
                               **bn_init(hidden_sizes[i + 1])))

    p["final"] = dict(w=nrm(next(keys), (hidden_sizes[-1], cfg["num_tasks"])),
                      b=nrm(next(keys), (1, cfg["num_tasks"])))
    return p


# ---------------------------------------------------------------------------
# Eval-mode parameter folding (BN -> weights / per-channel affine, im2col conv
# weights, block-diagonal attention score matrix).  Pure JAX, done once.
# Matmul weight matrices are cast to bf16 (MXU operands); biases / affines
# stay f32 since they are applied on the f32 accumulator.
# ---------------------------------------------------------------------------
def _fold_params(p, cfg):
    flat = [p["embedding"].astype(MM)]                         # [V, E]

    # Conv: conv -> ReLU -> dropout -> BN, so BN stays a per-channel affine.
    for c in p["convs"]:
        K, E, F = c["w"].shape
        s = c["gamma"] / jnp.sqrt(c["var"] + BN_EPS)           # [1, F]
        t = c["beta"] - c["mean"] * s                          # [1, F]
        flat += [c["w"].reshape(K * E, F).astype(MM), c["b"], s, t]

    # Attention: pack the per-head (A -> 1) alpha projections into one
    # block-diagonal [heads*A, heads] matrix so all heads' scores are one
    # MXU matmul.
    for a in p["attn"]:
        heads, A = a["v"].shape
        eye = jnp.eye(heads, dtype=F32)
        vbd = (a["v"][:, :, None] * eye[:, None, :]).reshape(heads * A, heads)
        flat += [a["wp"].astype(MM), a["bp"], vbd.astype(MM)]

    # Model-level BatchNorm1d folded into the first dense layer; each dense
    # layer's own BN (Linear -> BN -> ReLU) folded into its Linear weights.
    s0 = p["bn"]["gamma"][0] / jnp.sqrt(p["bn"]["var"][0] + BN_EPS)   # [D0]
    t0 = p["bn"]["beta"][0] - p["bn"]["mean"][0] * s0                 # [D0]
    for i, d in enumerate(p["dense"]):
        w, b = d["w"], d["b"]
        if i == 0:
            b = b + (t0 @ w)[None, :]
            w = w * s0[:, None]
        s = d["gamma"] / jnp.sqrt(d["var"] + BN_EPS)           # [1, out]
        w = w * s
        b = (b - d["mean"]) * s + d["beta"]
        flat += [w.astype(MM), b]

    flat += [p["final"]["w"].astype(MM), p["final"]["b"]]
    return flat


# ---------------------------------------------------------------------------
# Fused forward kernel (one grid step = one batch tile, everything in VMEM)
# ---------------------------------------------------------------------------
def _build_kernel(cfg, T, bt):
    E = cfg["smiles_embedding_size"]
    V = cfg["smiles_vocabulary_size"]
    heads = cfg["multiheads"]
    kernels = [k[0] for k in cfg["kernel_sizes"]]
    filters = cfg["filters"]
    n_conv = len(filters)
    n_attn = len(heads)
    n_dense = len(cfg["stacked_hidden_sizes"])
    widths = [E] + filters                    # per-scale feature width H
    max_pad = max((k // 2 for k in kernels), default=0)

    def kernel(*refs):
        it = iter(refs)
        ids_ref = next(it)                                     # [bt, T] int32
        emb_ref = next(it)                                     # [V, E]   bf16
        conv_p = [tuple(next(it) for _ in range(4)) for _ in range(n_conv)]
        attn_p = [tuple(next(it) for _ in range(3)) for _ in range(n_attn)]
        dense_p = [tuple(next(it) for _ in range(2)) for _ in range(n_dense)]
        fw_ref = next(it)
        fb_ref = next(it)
        alphas_ref = next(it)                                  # [bt, T, sum(heads)]
        enc_out_ref = next(it)                                 # [bt, last_hidden]
        preds_ref = next(it)                                   # [bt, num_tasks]

        # ---- embedding lookup as one-hot MXU matmul (no XLA gather) --------
        # TODO(synk): out-of-vocab ids map to a zero embedding (torch gather would not).
        ids = ids_ref[...]
        iota_v = jax.lax.broadcasted_iota(jnp.int32, (bt, T, V), 2)
        onehot = (iota_v == ids[:, :, None]).astype(MM)        # exact 0/1
        emb = jnp.dot(onehot.reshape(bt * T, V), emb_ref[...],
                      preferred_element_type=F32).reshape(bt, T, E)

        # ---- shared zero-padded halo, built as a traced value (no scratch) -
        if n_conv:
            zpad = jnp.zeros((bt, max_pad, E), F32)
            xpad = jnp.concatenate([zpad, emb, zpad], axis=1)  # [bt, T+2p, E]

        alpha_slabs = []
        enc_slabs = []
        # Conv scale `layer` is computed right before its attention layer so
        # its [bt, T, F] activation is discarded immediately after pooling.
        for layer in range(n_attn):
            H = widths[layer]
            nh = heads[layer]
            if layer == 0:
                x = emb
            else:
                K = kernels[layer - 1]
                start = max_pad - K // 2
                w_ref, b_ref, s_ref, t_ref = conv_p[layer - 1]
                # im2col built in vregs (traced concat) -> ONE MXU matmul
                xcol = jnp.concatenate(
                    [xpad[:, start + k:start + k + T, :] for k in range(K)],
                    axis=2)                                    # [bt, T, K*E]
                y = jnp.dot(xcol.reshape(bt * T, K * E).astype(MM), w_ref[...],
                            preferred_element_type=F32).reshape(bt, T, H)
                y = jnp.maximum(y + b_ref[...], 0.0)           # conv bias + ReLU
                x = y * s_ref[...] + t_ref[...]                # BatchNorm1d (eval)

            # -- multi-head self attention over this scale --------------------
            wp_ref, bp_ref, vbd_ref = attn_p[layer]
            x_mm = x.astype(MM)                                # matmul operand copy
            u = jnp.tanh(jnp.dot(x_mm.reshape(bt * T, H), wp_ref[...],
                                 preferred_element_type=F32)
                         + bp_ref[...])                        # [bt*T, nh*A] (f32)
            scores = jnp.dot(u.astype(MM), vbd_ref[...],       # block-diag heads
                             preferred_element_type=F32).reshape(bt, T, nh)
            m = jnp.max(scores, axis=1, keepdims=True)         # softmax over T (f32)
            e = jnp.exp(scores - m)
            alpha = e / jnp.sum(e, axis=1, keepdims=True)      # exact division
            alpha_slabs.append(alpha)
            # Pooled encodings for all heads of this scale in ONE batched MXU
            # contraction: enc[b, h, :] = sum_t alpha[b, t, h] * x[b, t, :].
            alpha_t = jnp.swapaxes(alpha, 1, 2).astype(MM)     # [bt, nh, T]
            enc = jax.lax.dot_general(alpha_t, x_mm,
                                      (((2,), (1,)), ((0,), (0,))),
                                      preferred_element_type=F32)  # [bt, nh, H]
            enc_slabs.append(enc.reshape(bt, nh * H))

        # ---- single lane-dense stores (no masked partial writes) -----------
        alphas_ref[...] = jnp.concatenate(alpha_slabs, axis=2)  # [bt, T, sum(heads)]
        h = jnp.concatenate(enc_slabs, axis=1)                  # [bt, D0]

        # ---- dense stack (layer BNs + model-level BN folded into weights) --
        for w_ref, b_ref in dense_p:
            h = jnp.maximum(jnp.dot(h.astype(MM), w_ref[...],
                                    preferred_element_type=F32) + b_ref[...], 0.0)
        # PyTorch returns the post-dense-stack activations as
        # prediction_dict['encodings'] (intentional, matches the reference).
        enc_out_ref[...] = h

        # ---- final EnsembleLayer(typ='score', size=1): Linear -> sigmoid ---
        logits = jnp.dot(h.astype(MM), fw_ref[...],
                         preferred_element_type=F32) + fb_ref[...]
        preds_ref[...] = jax.nn.sigmoid(logits)

    return kernel


# ---------------------------------------------------------------------------
# Forward wrapper
# ---------------------------------------------------------------------------
def _pick_batch_tile(B):
    # One step for small batches; otherwise a multiple-of-8 tile dividing B.
    if B <= 128:
        return B
    for bt in range(128, 0, -8):
        if B % bt == 0:
            return bt
    return B


def mca_forward(p, smiles, cfg, *, batch_tile=None):
    B, T = smiles.shape
    heads = cfg["multiheads"]
    kernels = [k[0] for k in cfg["kernel_sizes"]]
    filters = cfg["filters"]
    for k in kernels:   # even K would change output length vs PyTorch padding
        assert k % 2 == 1, "conv kernel heights must be odd"
    assert len(filters) + 1 == len(heads)

    d_last = cfg["stacked_hidden_sizes"][-1]
    total_heads = sum(heads)

    bt = batch_tile if batch_tile is not None else _pick_batch_tile(B)
    assert B % bt == 0 and (bt == B or bt % 8 == 0), "invalid batch tile"
    grid = (B // bt,)

    flat = _fold_params(p, cfg)
    args = [smiles.astype(jnp.int32)] + flat

    in_specs = [pl.BlockSpec((bt, T), lambda b: (b, 0))]
    in_specs += [pl.BlockSpec(a.shape, lambda b, nd=a.ndim: (0,) * nd) for a in flat]

    out_shape = (
        jax.ShapeDtypeStruct((B, T, total_heads), F32),         # attention weights
        jax.ShapeDtypeStruct((B, d_last), F32),                 # post-dense encodings
        jax.ShapeDtypeStruct((B, cfg["num_tasks"]), F32),       # toxicity predictions
    )
    out_specs = (
        pl.BlockSpec((bt, T, total_heads), lambda b: (b, 0, 0)),
        pl.BlockSpec((bt, d_last), lambda b: (b, 0)),
        pl.BlockSpec((bt, cfg["num_tasks"]), lambda b: (b, 0)),
    )

    alphas, enc, preds = pl.pallas_call(
        _build_kernel(cfg, T, bt),
        grid=grid,
        out_shape=out_shape,
        in_specs=in_specs,
        out_specs=out_specs,
        # Batch axis is embarrassingly parallel (shards across v7x's 2 TCs).
        # TODO(synk): when scaling batch_tile up, size it against v7x's 64 MiB
        # VMEM and raise vmem_limit_bytes explicitly; at these sizes the
        # default scoped limit is ample.
        compiler_params=pltpu.CompilerParams(
            dimension_semantics=("parallel",)),
    )(*args)

    smiles_alphas = [alphas[:, :, i] for i in range(total_heads)]
    prediction_dict = {"smiles_attention": smiles_alphas,
                       "toxicities": preds,
                       "encodings": enc}
    return preds, prediction_dict


# ---------------------------------------------------------------------------
if __name__ == "__main__":
    cfg = dict(
        smiles_vocabulary_size=28,
        smiles_embedding_size=8,
        filters=[16, 16],
        kernel_sizes=[[3, 8], [5, 8]],
        multiheads=[4, 4, 4],
        smiles_attention_size=16,
        stacked_hidden_sizes=[64, 32],
        num_tasks=12,
    )

    key = jax.random.PRNGKey(0)
    pkey, skey = jax.random.split(key)
    params = init_params(pkey, cfg)

    B, T = 2, 16
    smiles = jax.random.randint(skey, (B, T), 0, cfg["smiles_vocabulary_size"],
                                dtype=jnp.int32)

    fwd = jax.jit(functools.partial(mca_forward, cfg=cfg))
    preds, pred_dict = fwd(params, smiles)
    preds = jax.block_until_ready(preds)

    assert preds.shape == (B, cfg["num_tasks"])
    assert bool(jnp.all(jnp.isfinite(preds)))
    assert bool(jnp.all((preds >= 0.0) & (preds <= 1.0)))      # sigmoid output
    assert len(pred_dict["smiles_attention"]) == sum(cfg["multiheads"])
    assert pred_dict["smiles_attention"][0].shape == (B, T)
    assert pred_dict["encodings"].shape == (B, cfg["stacked_hidden_sizes"][-1])
    print("KERNEL_OK")
</pallas_src>

<mosaic_0001>
module attributes {stable_mosaic.version = 11 : i64} {
  func.func @kernel(%arg0: i32, %arg1: memref<2x16xi32, #tpu.memory_space<vmem>>, %arg2: memref<28x8xbf16, #tpu.memory_space<vmem>>, %arg3: memref<24x16xbf16, #tpu.memory_space<vmem>>, %arg4: memref<1x16xf32, #tpu.memory_space<vmem>>, %arg5: memref<1x16xf32, #tpu.memory_space<vmem>>, %arg6: memref<1x16xf32, #tpu.memory_space<vmem>>, %arg7: memref<40x16xbf16, #tpu.memory_space<vmem>>, %arg8: memref<1x16xf32, #tpu.memory_space<vmem>>, %arg9: memref<1x16xf32, #tpu.memory_space<vmem>>, %arg10: memref<1x16xf32, #tpu.memory_space<vmem>>, %arg11: memref<8x64xbf16, #tpu.memory_space<vmem>>, %arg12: memref<1x64xf32, #tpu.memory_space<vmem>>, %arg13: memref<64x4xbf16, #tpu.memory_space<vmem>>, %arg14: memref<16x64xbf16, #tpu.memory_space<vmem>>, %arg15: memref<1x64xf32, #tpu.memory_space<vmem>>, %arg16: memref<64x4xbf16, #tpu.memory_space<vmem>>, %arg17: memref<16x64xbf16, #tpu.memory_space<vmem>>, %arg18: memref<1x64xf32, #tpu.memory_space<vmem>>, %arg19: memref<64x4xbf16, #tpu.memory_space<vmem>>, %arg20: memref<160x64xbf16, #tpu.memory_space<vmem>>, %arg21: memref<1x64xf32, #tpu.memory_space<vmem>>, %arg22: memref<64x32xbf16, #tpu.memory_space<vmem>>, %arg23: memref<1x32xf32, #tpu.memory_space<vmem>>, %arg24: memref<32x12xbf16, #tpu.memory_space<vmem>>, %arg25: memref<1x12xf32, #tpu.memory_space<vmem>>, %arg26: memref<2x16x12xf32, #tpu.memory_space<vmem>>, %arg27: memref<2x32xf32, #tpu.memory_space<vmem>>, %arg28: memref<2x12xf32, #tpu.memory_space<vmem>>) attributes {dimension_semantics = [#tpu.dimension_semantics<parallel>], iteration_bounds = array<i64: 1>, scalar_prefetch = 0 : i64, scratch_operands = 0 : i64, tpu.core_type = #tpu.core_type<tc>, window_params = [{transform_indices = @transform_0, window_bounds = array<i64: 2, 16>}, {pipeline_mode = #tpu.pipeline_mode<synchronous>, transform_indices = @transform_1, window_bounds = array<i64: 28, 8>}, {pipeline_mode = #tpu.pipeline_mode<synchronous>, transform_indices = @transform_2, window_bounds = array<i64: 24, 16>}, {pipeline_mode = #tpu.pipeline_mode<synchronous>, transform_indices = @transform_3, window_bounds = array<i64: 1, 16>}, {pipeline_mode = #tpu.pipeline_mode<synchronous>, transform_indices = @transform_4, window_bounds = array<i64: 1, 16>}, {pipeline_mode = #tpu.pipeline_mode<synchronous>, transform_indices = @transform_5, window_bounds = array<i64: 1, 16>}, {pipeline_mode = #tpu.pipeline_mode<synchronous>, transform_indices = @transform_6, window_bounds = array<i64: 40, 16>}, {pipeline_mode = #tpu.pipeline_mode<synchronous>, transform_indices = @transform_7, window_bounds = array<i64: 1, 16>}, {pipeline_mode = #tpu.pipeline_mode<synchronous>, transform_indices = @transform_8, window_bounds = array<i64: 1, 16>}, {pipeline_mode = #tpu.pipeline_mode<synchronous>, transform_indices = @transform_9, window_bounds = array<i64: 1, 16>}, {pipeline_mode = #tpu.pipeline_mode<synchronous>, transform_indices = @transform_10, window_bounds = array<i64: 8, 64>}, {pipeline_mode = #tpu.pipeline_mode<synchronous>, transform_indices = @transform_11, window_bounds = array<i64: 1, 64>}, {pipeline_mode = #tpu.pipeline_mode<synchronous>, transform_indices = @transform_12, window_bounds = array<i64: 64, 4>}, {pipeline_mode = #tpu.pipeline_mode<synchronous>, transform_indices = @transform_13, window_bounds = array<i64: 16, 64>}, {pipeline_mode = #tpu.pipeline_mode<synchronous>, transform_indices = @transform_14, window_bounds = array<i64: 1, 64>}, {pipeline_mode = #tpu.pipeline_mode<synchronous>, transform_indices = @transform_15, window_bounds = array<i64: 64, 4>}, {pipeline_mode = #tpu.pipeline_mode<synchronous>, transform_indices = @transform_16, window_bounds = array<i64: 16, 64>}, {pipeline_mode = #tpu.pipeline_mode<synchronous>, transform_indices = @transform_17, window_bounds = array<i64: 1, 64>}, {pipeline_mode = #tpu.pipeline_mode<synchronous>, transform_indices = @transform_18, window_bounds = array<i64: 64, 4>}, {pipeline_mode = #tpu.pipeline_mode<synchronous>, transform_indices = @transform_19, window_bounds = array<i64: 160, 64>}, {pipeline_mode = #tpu.pipeline_mode<synchronous>, transform_indices = @transform_20, window_bounds = array<i64: 1, 64>}, {pipeline_mode = #tpu.pipeline_mode<synchronous>, transform_indices = @transform_21, window_bounds = array<i64: 64, 32>}, {pipeline_mode = #tpu.pipeline_mode<synchronous>, transform_indices = @transform_22, window_bounds = array<i64: 1, 32>}, {pipeline_mode = #tpu.pipeline_mode<synchronous>, transform_indices = @transform_23, window_bounds = array<i64: 32, 12>}, {pipeline_mode = #tpu.pipeline_mode<synchronous>, transform_indices = @transform_24, window_bounds = array<i64: 1, 12>}, {transform_indices = @transform_25, window_bounds = array<i64: 2, 16, 12>}, {transform_indices = @transform_26, window_bounds = array<i64: 2, 32>}, {transform_indices = @transform_27, window_bounds = array<i64: 2, 12>}]} {
    %c0 = arith.constant 0 : index
    %c0_0 = arith.constant 0 : index
    %0 = vector.load %arg1[%c0, %c0_0] : memref<2x16xi32, #tpu.memory_space<vmem>>, vector<2x16xi32>
    %1 = tpu.iota {dimensions = array<i32: 2>} : vector<2x16x28xi32>
    %2 = vector.shape_cast %0 : vector<2x16xi32> to vector<2x16x1xi32>
    %3 = vector.broadcast %2 : vector<2x16x1xi32> to vector<2x16x28xi32>
    %4 = arith.cmpi eq, %1, %3 : vector<2x16x28xi32>
    %5 = arith.extui %4 : vector<2x16x28xi1> to vector<2x16x28xi32>
    %6 = arith.sitofp %5 : vector<2x16x28xi32> to vector<2x16x28xf32>
    %7 = arith.truncf %6 : vector<2x16x28xf32> to vector<2x16x28xbf16>
    %8 = vector.shape_cast %7 : vector<2x16x28xbf16> to vector<32x28xbf16>
    %c0_1 = arith.constant 0 : index
    %c0_2 = arith.constant 0 : index
    %9 = vector.load %arg2[%c0_1, %c0_2] : memref<28x8xbf16, #tpu.memory_space<vmem>>, vector<28x8xbf16>
    %cst = arith.constant dense<0.000000e+00> : vector<32x8xf32>
    %10 = tpu.matmul %8, %9, %cst {dimension_numbers = #tpu.dot_dimension_numbers<[1], [0], [0], [1], [0, 0, 1, 1], [], []>} : vector<32x28xbf16>, vector<28x8xbf16>, vector<32x8xf32> -> vector<32x8xf32>
    %11 = vector.shape_cast %10 : vector<32x8xf32> to vector<2x16x8xf32>
    %cst_3 = arith.constant 0.000000e+00 : f32
    %12 = vector.broadcast %cst_3 : f32 to vector<2x2x8xf32>
    %13 = tpu.concatenate %12, %11, %12 in 1 : vector<2x2x8xf32>, vector<2x16x8xf32>, vector<2x2x8xf32> -> vector<2x20x8xf32>
    %14 = arith.truncf %11 : vector<2x16x8xf32> to vector<2x16x8xbf16>
    %15 = vector.shape_cast %14 : vector<2x16x8xbf16> to vector<32x8xbf16>
    %c0_4 = arith.constant 0 : index
    %c0_5 = arith.constant 0 : index
    %16 = vector.load %arg11[%c0_4, %c0_5] : memref<8x64xbf16, #tpu.memory_space<vmem>>, vector<8x64xbf16>
    %cst_6 = arith.constant dense<0.000000e+00> : vector<32x64xf32>
    %17 = tpu.matmul %15, %16, %cst_6 {dimension_numbers = #tpu.dot_dimension_numbers<[1], [0], [0], [1], [0, 0, 1, 1], [], []>} : vector<32x8xbf16>, vector<8x64xbf16>, vector<32x64xf32> -> vector<32x64xf32>
    %c0_7 = arith.constant 0 : index
    %c0_8 = arith.constant 0 : index
    %18 = vector.load %arg12[%c0_7, %c0_8] : memref<1x64xf32, #tpu.memory_space<vmem>>, vector<1x64xf32>
    %19 = vector.broadcast %18 : vector<1x64xf32> to vector<32x64xf32>
    %20 = arith.addf %17, %19 : vector<32x64xf32>
    %21 = math.tanh %20 : vector<32x64xf32>
    %22 = arith.truncf %21 : vector<32x64xf32> to vector<32x64xbf16>
    %c0_9 = arith.constant 0 : index
    %c0_10 = arith.constant 0 : index
    %23 = vector.load %arg13[%c0_9, %c0_10] : memref<64x4xbf16, #tpu.memory_space<vmem>>, vector<64x4xbf16>
    %cst_11 = arith.constant dense<0.000000e+00> : vector<32x4xf32>
    %24 = tpu.matmul %22, %23, %cst_11 {dimension_numbers = #tpu.dot_dimension_numbers<[1], [0], [0], [1], [0, 0, 1, 1], [], []>} : vector<32x64xbf16>, vector<64x4xbf16>, vector<32x4xf32> -> vector<32x4xf32>
    %25 = vector.shape_cast %24 : vector<32x4xf32> to vector<2x16x4xf32>
    %cst_12 = arith.constant dense<0xFF800000> : vector<2x4xf32>
    %26 = vector.multi_reduction <maximumf>, %25, %cst_12 [1] : vector<2x16x4xf32> to vector<2x4xf32>
    %27 = vector.shape_cast %26 : vector<2x4xf32> to vector<2x1x4xf32>
    %28 = vector.broadcast %27 : vector<2x1x4xf32> to vector<2x16x4xf32>
    %29 = arith.subf %25, %28 : vector<2x16x4xf32>
    %30 = math.exp %29 : vector<2x16x4xf32>
    %cst_13 = arith.constant dense<0.000000e+00> : vector<2x4xf32>
    %31 = vector.multi_reduction <add>, %30, %cst_13 [1] : vector<2x16x4xf32> to vector<2x4xf32>
    %32 = vector.shape_cast %31 : vector<2x4xf32> to vector<2x1x4xf32>
    %33 = vector.broadcast %32 : vector<2x1x4xf32> to vector<2x16x4xf32>
    %34 = arith.divf %30, %33 : vector<2x16x4xf32>
    %35 = tpu.transpose %34, [0, 2, 1] : vector<2x16x4xf32> -> vector<2x4x16xf32>
    %36 = arith.truncf %35 : vector<2x4x16xf32> to vector<2x4x16xbf16>
    %cst_14 = arith.constant dense<0.000000e+00> : vector<2x4x8xf32>
    %37 = tpu.matmul %36, %14, %cst_14 {dimension_numbers = #tpu.dot_dimension_numbers<[2], [1], [1], [2], [0, 0, 0, 1, 1, 2], [0], [0]>} : vector<2x4x16xbf16>, vector<2x16x8xbf16>, vector<2x4x8xf32> -> vector<2x4x8xf32>
    %38 = vector.shape_cast %37 : vector<2x4x8xf32> to vector<2x32xf32>
    %39 = vector.extract_strided_slice %13 {offsets = [0, 1, 0], sizes = [2, 16, 8], strides = [1, 1, 1]} : vector<2x20x8xf32> to vector<2x16x8xf32>
    %40 = vector.extract_strided_slice %13 {offsets = [0, 2, 0], sizes = [2, 16, 8], strides = [1, 1, 1]} : vector<2x20x8xf32> to vector<2x16x8xf32>
    %41 = vector.extract_strided_slice %13 {offsets = [0, 3, 0], sizes = [2, 16, 8], strides = [1, 1, 1]} : vector<2x20x8xf32> to vector<2x16x8xf32>
    %42 = tpu.concatenate %39, %40, %41 in 2 : vector<2x16x8xf32>, vector<2x16x8xf32>, vector<2x16x8xf32> -> vector<2x16x24xf32>
    %43 = vector.shape_cast %42 : vector<2x16x24xf32> to vector<32x24xf32>
    %44 = arith.truncf %43 : vector<32x24xf32> to vector<32x24xbf16>
    %c0_15 = arith.constant 0 : index
    %c0_16 = arith.constant 0 : index
    %45 = vector.load %arg3[%c0_15, %c0_16] : memref<24x16xbf16, #tpu.memory_space<vmem>>, vector<24x16xbf16>
    %cst_17 = arith.constant dense<0.000000e+00> : vector<32x16xf32>
    %46 = tpu.matmul %44, %45, %cst_17 {dimension_numbers = #tpu.dot_dimension_numbers<[1], [0], [0], [1], [0, 0, 1, 1], [], []>} : vector<32x24xbf16>, vector<24x16xbf16>, vector<32x16xf32> -> vector<32x16xf32>
    %47 = vector.shape_cast %46 : vector<32x16xf32> to vector<2x16x16xf32>
    %c0_18 = arith.constant 0 : index
    %c0_19 = arith.constant 0 : index
    %48 = vector.load %arg4[%c0_18, %c0_19] : memref<1x16xf32, #tpu.memory_space<vmem>>, vector<1x16xf32>
    %49 = vector.shape_cast %48 : vector<1x16xf32> to vector<1x1x16xf32>
    %50 = vector.broadcast %49 : vector<1x1x16xf32> to vector<2x16x16xf32>
    %51 = arith.addf %47, %50 : vector<2x16x16xf32>
    %cst_20 = arith.constant 0.000000e+00 : f32
    %52 = vector.broadcast %cst_20 : f32 to vector<2x16x16xf32>
    %53 = arith.maximumf %51, %52 : vector<2x16x16xf32>
    %c0_21 = arith.constant 0 : index
    %c0_22 = arith.constant 0 : index
    %54 = vector.load %arg5[%c0_21, %c0_22] : memref<1x16xf32, #tpu.memory_space<vmem>>, vector<1x16xf32>
    %55 = vector.shape_cast %54 : vector<1x16xf32> to vector<1x1x16xf32>
    %56 = vector.broadcast %55 : vector<1x1x16xf32> to vector<2x16x16xf32>
    %57 = arith.mulf %53, %56 : vector<2x16x16xf32>
    %c0_23 = arith.constant 0 : index
    %c0_24 = arith.constant 0 : index
    %58 = vector.load %arg6[%c0_23, %c0_24] : memref<1x16xf32, #tpu.memory_space<vmem>>, vector<1x16xf32>
    %59 = vector.shape_cast %58 : vector<1x16xf32> to vector<1x1x16xf32>
    %60 = vector.broadcast %59 : vector<1x1x16xf32> to vector<2x16x16xf32>
    %61 = arith.addf %57, %60 : vector<2x16x16xf32>
    %62 = arith.truncf %61 : vector<2x16x16xf32> to vector<2x16x16xbf16>
    %63 = vector.shape_cast %62 : vector<2x16x16xbf16> to vector<32x16xbf16>
    %c0_25 = arith.constant 0 : index
    %c0_26 = arith.constant 0 : index
    %64 = vector.load %arg14[%c0_25, %c0_26] : memref<16x64xbf16, #tpu.memory_space<vmem>>, vector<16x64xbf16>
    %cst_27 = arith.constant dense<0.000000e+00> : vector<32x64xf32>
    %65 = tpu.matmul %63, %64, %cst_27 {dimension_numbers = #tpu.dot_dimension_numbers<[1], [0], [0], [1], [0, 0, 1, 1], [], []>} : vector<32x16xbf16>, vector<16x64xbf16>, vector<32x64xf32> -> vector<32x64xf32>
    %c0_28 = arith.constant 0 : index
    %c0_29 = arith.constant 0 : index
    %66 = vector.load %arg15[%c0_28, %c0_29] : memref<1x64xf32, #tpu.memory_space<vmem>>, vector<1x64xf32>
    %67 = vector.broadcast %66 : vector<1x64xf32> to vector<32x64xf32>
    %68 = arith.addf %65, %67 : vector<32x64xf32>
    %69 = math.tanh %68 : vector<32x64xf32>
    %70 = arith.truncf %69 : vector<32x64xf32> to vector<32x64xbf16>
    %c0_30 = arith.constant 0 : index
    %c0_31 = arith.constant 0 : index
    %71 = vector.load %arg16[%c0_30, %c0_31] : memref<64x4xbf16, #tpu.memory_space<vmem>>, vector<64x4xbf16>
    %cst_32 = arith.constant dense<0.000000e+00> : vector<32x4xf32>
    %72 = tpu.matmul %70, %71, %cst_32 {dimension_numbers = #tpu.dot_dimension_numbers<[1], [0], [0], [1], [0, 0, 1, 1], [], []>} : vector<32x64xbf16>, vector<64x4xbf16>, vector<32x4xf32> -> vector<32x4xf32>
    %73 = vector.shape_cast %72 : vector<32x4xf32> to vector<2x16x4xf32>
    %cst_33 = arith.constant dense<0xFF800000> : vector<2x4xf32>
    %74 = vector.multi_reduction <maximumf>, %73, %cst_33 [1] : vector<2x16x4xf32> to vector<2x4xf32>
    %75 = vector.shape_cast %74 : vector<2x4xf32> to vector<2x1x4xf32>
    %76 = vector.broadcast %75 : vector<2x1x4xf32> to vector<2x16x4xf32>
    %77 = arith.subf %73, %76 : vector<2x16x4xf32>
    %78 = math.exp %77 : vector<2x16x4xf32>
    %cst_34 = arith.constant dense<0.000000e+00> : vector<2x4xf32>
    %79 = vector.multi_reduction <add>, %78, %cst_34 [1] : vector<2x16x4xf32> to vector<2x4xf32>
    %80 = vector.shape_cast %79 : vector<2x4xf32> to vector<2x1x4xf32>
    %81 = vector.broadcast %80 : vector<2x1x4xf32> to vector<2x16x4xf32>
    %82 = arith.divf %78, %81 : vector<2x16x4xf32>
    %83 = tpu.transpose %82, [0, 2, 1] : vector<2x16x4xf32> -> vector<2x4x16xf32>
    %84 = arith.truncf %83 : vector<2x4x16xf32> to vector<2x4x16xbf16>
    %cst_35 = arith.constant dense<0.000000e+00> : vector<2x4x16xf32>
    %85 = tpu.matmul %84, %62, %cst_35 {dimension_numbers = #tpu.dot_dimension_numbers<[2], [1], [1], [2], [0, 0, 0, 1, 1, 2], [0], [0]>} : vector<2x4x16xbf16>, vector<2x16x16xbf16>, vector<2x4x16xf32> -> vector<2x4x16xf32>
    %86 = vector.shape_cast %85 : vector<2x4x16xf32> to vector<2x64xf32>
    %87 = vector.extract_strided_slice %13 {offsets = [0, 0, 0], sizes = [2, 16, 8], strides = [1, 1, 1]} : vector<2x20x8xf32> to vector<2x16x8xf32>
    %88 = vector.extract_strided_slice %13 {offsets = [0, 1, 0], sizes = [2, 16, 8], strides = [1, 1, 1]} : vector<2x20x8xf32> to vector<2x16x8xf32>
    %89 = vector.extract_strided_slice %13 {offsets = [0, 2, 0], sizes = [2, 16, 8], strides = [1, 1, 1]} : vector<2x20x8xf32> to vector<2x16x8xf32>
    %90 = vector.extract_strided_slice %13 {offsets = [0, 3, 0], sizes = [2, 16, 8], strides = [1, 1, 1]} : vector<2x20x8xf32> to vector<2x16x8xf32>
    %91 = vector.extract_strided_slice %13 {offsets = [0, 4, 0], sizes = [2, 16, 8], strides = [1, 1, 1]} : vector<2x20x8xf32> to vector<2x16x8xf32>
    %92 = tpu.concatenate %87, %88, %89, %90, %91 in 2 : vector<2x16x8xf32>, vector<2x16x8xf32>, vector<2x16x8xf32>, vector<2x16x8xf32>, vector<2x16x8xf32> -> vector<2x16x40xf32>
    %93 = vector.shape_cast %92 : vector<2x16x40xf32> to vector<32x40xf32>
    %94 = arith.truncf %93 : vector<32x40xf32> to vector<32x40xbf16>
    %c0_36 = arith.constant 0 : index
    %c0_37 = arith.constant 0 : index
    %95 = vector.load %arg7[%c0_36, %c0_37] : memref<40x16xbf16, #tpu.memory_space<vmem>>, vector<40x16xbf16>
    %cst_38 = arith.constant dense<0.000000e+00> : vector<32x16xf32>
    %96 = tpu.matmul %94, %95, %cst_38 {dimension_numbers = #tpu.dot_dimension_numbers<[1], [0], [0], [1], [0, 0, 1, 1], [], []>} : vector<32x40xbf16>, vector<40x16xbf16>, vector<32x16xf32> -> vector<32x16xf32>
    %97 = vector.shape_cast %96 : vector<32x16xf32> to vector<2x16x16xf32>
    %c0_39 = arith.constant 0 : index
    %c0_40 = arith.constant 0 : index
    %98 = vector.load %arg8[%c0_39, %c0_40] : memref<1x16xf32, #tpu.memory_space<vmem>>, vector<1x16xf32>
    %99 = vector.shape_cast %98 : vector<1x16xf32> to vector<1x1x16xf32>
    %100 = vector.broadcast %99 : vector<1x1x16xf32> to vector<2x16x16xf32>
    %101 = arith.addf %97, %100 : vector<2x16x16xf32>
    %cst_41 = arith.constant 0.000000e+00 : f32
    %102 = vector.broadcast %cst_41 : f32 to vector<2x16x16xf32>
    %103 = arith.maximumf %101, %102 : vector<2x16x16xf32>
    %c0_42 = arith.constant 0 : index
    %c0_43 = arith.constant 0 : index
    %104 = vector.load %arg9[%c0_42, %c0_43] : memref<1x16xf32, #tpu.memory_space<vmem>>, vector<1x16xf32>
    %105 = vector.shape_cast %104 : vector<1x16xf32> to vector<1x1x16xf32>
    %106 = vector.broadcast %105 : vector<1x1x16xf32> to vector<2x16x16xf32>
    %107 = arith.mulf %103, %106 : vector<2x16x16xf32>
    %c0_44 = arith.constant 0 : index
    %c0_45 = arith.constant 0 : index
    %108 = vector.load %arg10[%c0_44, %c0_45] : memref<1x16xf32, #tpu.memory_space<vmem>>, vector<1x16xf32>
    %109 = vector.shape_cast %108 : vector<1x16xf32> to vector<1x1x16xf32>
    %110 = vector.broadcast %109 : vector<1x1x16xf32> to vector<2x16x16xf32>
    %111 = arith.addf %107, %110 : vector<2x16x16xf32>
    %112 = arith.truncf %111 : vector<2x16x16xf32> to vector<2x16x16xbf16>
    %113 = vector.shape_cast %112 : vector<2x16x16xbf16> to vector<32x16xbf16>
    %c0_46 = arith.constant 0 : index
    %c0_47 = arith.constant 0 : index
    %114 = vector.load %arg17[%c0_46, %c0_47] : memref<16x64xbf16, #tpu.memory_space<vmem>>, vector<16x64xbf16>
    %cst_48 = arith.constant dense<0.000000e+00> : vector<32x64xf32>
    %115 = tpu.matmul %113, %114, %cst_48 {dimension_numbers = #tpu.dot_dimension_numbers<[1], [0], [0], [1], [0, 0, 1, 1], [], []>} : vector<32x16xbf16>, vector<16x64xbf16>, vector<32x64xf32> -> vector<32x64xf32>
    %c0_49 = arith.constant 0 : index
    %c0_50 = arith.constant 0 : index
    %116 = vector.load %arg18[%c0_49, %c0_50] : memref<1x64xf32, #tpu.memory_space<vmem>>, vector<1x64xf32>
    %117 = vector.broadcast %116 : vector<1x64xf32> to vector<32x64xf32>
    %118 = arith.addf %115, %117 : vector<32x64xf32>
    %119 = math.tanh %118 : vector<32x64xf32>
    %120 = arith.truncf %119 : vector<32x64xf32> to vector<32x64xbf16>
    %c0_51 = arith.constant 0 : index
    %c0_52 = arith.constant 0 : index
    %121 = vector.load %arg19[%c0_51, %c0_52] : memref<64x4xbf16, #tpu.memory_space<vmem>>, vector<64x4xbf16>
    %cst_53 = arith.constant dense<0.000000e+00> : vector<32x4xf32>
    %122 = tpu.matmul %120, %121, %cst_53 {dimension_numbers = #tpu.dot_dimension_numbers<[1], [0], [0], [1], [0, 0, 1, 1], [], []>} : vector<32x64xbf16>, vector<64x4xbf16>, vector<32x4xf32> -> vector<32x4xf32>
    %123 = vector.shape_cast %122 : vector<32x4xf32> to vector<2x16x4xf32>
    %cst_54 = arith.constant dense<0xFF800000> : vector<2x4xf32>
    %124 = vector.multi_reduction <maximumf>, %123, %cst_54 [1] : vector<2x16x4xf32> to vector<2x4xf32>
    %125 = vector.shape_cast %124 : vector<2x4xf32> to vector<2x1x4xf32>
    %126 = vector.broadcast %125 : vector<2x1x4xf32> to vector<2x16x4xf32>
    %127 = arith.subf %123, %126 : vector<2x16x4xf32>
    %128 = math.exp %127 : vector<2x16x4xf32>
    %cst_55 = arith.constant dense<0.000000e+00> : vector<2x4xf32>
    %129 = vector.multi_reduction <add>, %128, %cst_55 [1] : vector<2x16x4xf32> to vector<2x4xf32>
    %130 = vector.shape_cast %129 : vector<2x4xf32> to vector<2x1x4xf32>
    %131 = vector.broadcast %130 : vector<2x1x4xf32> to vector<2x16x4xf32>
    %132 = arith.divf %128, %131 : vector<2x16x4xf32>
    %133 = tpu.transpose %132, [0, 2, 1] : vector<2x16x4xf32> -> vector<2x4x16xf32>
    %134 = arith.truncf %133 : vector<2x4x16xf32> to vector<2x4x16xbf16>
    %cst_56 = arith.constant dense<0.000000e+00> : vector<2x4x16xf32>
    %135 = tpu.matmul %134, %112, %cst_56 {dimension_numbers = #tpu.dot_dimension_numbers<[2], [1], [1], [2], [0, 0, 0, 1, 1, 2], [0], [0]>} : vector<2x4x16xbf16>, vector<2x16x16xbf16>, vector<2x4x16xf32> -> vector<2x4x16xf32>
    %136 = vector.shape_cast %135 : vector<2x4x16xf32> to vector<2x64xf32>
    %137 = tpu.concatenate %34, %82, %132 in 2 : vector<2x16x4xf32>, vector<2x16x4xf32>, vector<2x16x4xf32> -> vector<2x16x12xf32>
    %c0_57 = arith.constant 0 : index
    %c0_58 = arith.constant 0 : index
    %c0_59 = arith.constant 0 : index
    %138 = vector.load %arg26[%c0_57, %c0_58, %c0_59] : memref<2x16x12xf32, #tpu.memory_space<vmem>>, vector<2x16x12xf32>
    tpu.vector_store %arg26[%c0_57, %c0_58, %c0_59], %137 {strides = array<i32>} : memref<2x16x12xf32, #tpu.memory_space<vmem>>, vector<2x16x12xf32>,
    %139 = tpu.concatenate %38, %86, %136 in 1 : vector<2x32xf32>, vector<2x64xf32>, vector<2x64xf32> -> vector<2x160xf32>
    %140 = arith.truncf %139 : vector<2x160xf32> to vector<2x160xbf16>
    %c0_60 = arith.constant 0 : index
    %c0_61 = arith.constant 0 : index
    %141 = vector.load %arg20[%c0_60, %c0_61] : memref<160x64xbf16, #tpu.memory_space<vmem>>, vector<160x64xbf16>
    %cst_62 = arith.constant dense<0.000000e+00> : vector<2x64xf32>
    %142 = tpu.matmul %140, %141, %cst_62 {dimension_numbers = #tpu.dot_dimension_numbers<[1], [0], [0], [1], [0, 0, 1, 1], [], []>} : vector<2x160xbf16>, vector<160x64xbf16>, vector<2x64xf32> -> vector<2x64xf32>
    %c0_63 = arith.constant 0 : index
    %c0_64 = arith.constant 0 : index
    %143 = vector.load %arg21[%c0_63, %c0_64] : memref<1x64xf32, #tpu.memory_space<vmem>>, vector<1x64xf32>
    %144 = vector.broadcast %143 : vector<1x64xf32> to vector<2x64xf32>
    %145 = arith.addf %142, %144 : vector<2x64xf32>
    %cst_65 = arith.constant 0.000000e+00 : f32
    %146 = vector.broadcast %cst_65 : f32 to vector<2x64xf32>
    %147 = arith.maximumf %145, %146 : vector<2x64xf32>
    %148 = arith.truncf %147 : vector<2x64xf32> to vector<2x64xbf16>
    %c0_66 = arith.constant 0 : index
    %c0_67 = arith.constant 0 : index
    %149 = vector.load %arg22[%c0_66, %c0_67] : memref<64x32xbf16, #tpu.memory_space<vmem>>, vector<64x32xbf16>
    %cst_68 = arith.constant dense<0.000000e+00> : vector<2x32xf32>
    %150 = tpu.matmul %148, %149, %cst_68 {dimension_numbers = #tpu.dot_dimension_numbers<[1], [0], [0], [1], [0, 0, 1, 1], [], []>} : vector<2x64xbf16>, vector<64x32xbf16>, vector<2x32xf32> -> vector<2x32xf32>
    %c0_69 = arith.constant 0 : index
    %c0_70 = arith.constant 0 : index
    %151 = vector.load %arg23[%c0_69, %c0_70] : memref<1x32xf32, #tpu.memory_space<vmem>>, vector<1x32xf32>
    %152 = vector.broadcast %151 : vector<1x32xf32> to vector<2x32xf32>
    %153 = arith.addf %150, %152 : vector<2x32xf32>
    %cst_71 = arith.constant 0.000000e+00 : f32
    %154 = vector.broadcast %cst_71 : f32 to vector<2x32xf32>
    %155 = arith.maximumf %153, %154 : vector<2x32xf32>
    %c0_72 = arith.constant 0 : index
    %c0_73 = arith.constant 0 : index
    %156 = vector.load %arg27[%c0_72, %c0_73] : memref<2x32xf32, #tpu.memory_space<vmem>>, vector<2x32xf32>
    tpu.vector_store %arg27[%c0_72, %c0_73], %155 {strides = array<i32>} : memref<2x32xf32, #tpu.memory_space<vmem>>, vector<2x32xf32>,
    %157 = arith.truncf %155 : vector<2x32xf32> to vector<2x32xbf16>
    %c0_74 = arith.constant 0 : index
    %c0_75 = arith.constant 0 : index
    %158 = vector.load %arg24[%c0_74, %c0_75] : memref<32x12xbf16, #tpu.memory_space<vmem>>, vector<32x12xbf16>
    %cst_76 = arith.constant dense<0.000000e+00> : vector<2x12xf32>
    %159 = tpu.matmul %157, %158, %cst_76 {dimension_numbers = #tpu.dot_dimension_numbers<[1], [0], [0], [1], [0, 0, 1, 1], [], []>} : vector<2x32xbf16>, vector<32x12xbf16>, vector<2x12xf32> -> vector<2x12xf32>
    %c0_77 = arith.constant 0 : index
    %c0_78 = arith.constant 0 : index
    %160 = vector.load %arg25[%c0_77, %c0_78] : memref<1x12xf32, #tpu.memory_space<vmem>>, vector<1x12xf32>
    %161 = vector.broadcast %160 : vector<1x12xf32> to vector<2x12xf32>
    %162 = arith.addf %159, %161 : vector<2x12xf32>
    %163 = arith.negf %162 : vector<2x12xf32>
    %164 = math.exp %163 : vector<2x12xf32>
    %cst_79 = arith.constant 1.000000e+00 : f32
    %165 = vector.broadcast %cst_79 : f32 to vector<2x12xf32>
    %166 = arith.addf %165, %164 : vector<2x12xf32>
    %167 = arith.divf %165, %166 : vector<2x12xf32>
    %c0_80 = arith.constant 0 : index
    %c0_81 = arith.constant 0 : index
    %168 = vector.load %arg28[%c0_80, %c0_81] : memref<2x12xf32, #tpu.memory_space<vmem>>, vector<2x12xf32>
    tpu.vector_store %arg28[%c0_80, %c0_81], %167 {strides = array<i32>} : memref<2x12xf32, #tpu.memory_space<vmem>>, vector<2x12xf32>,
    return
  }
  func.func @transform_0(%arg0: i32) -> (i32, i32) {
    %c0_i32 = arith.constant 0 : i32
    %c0_i32_0 = arith.constant 0 : i32
    return %arg0, %c0_i32 : i32, i32
  }
  func.func @transform_1(%arg0: i32) -> (i32, i32) {
    %c0_i32 = arith.constant 0 : i32
    %c0_i32_0 = arith.constant 0 : i32
    %c0_i32_1 = arith.constant 0 : i32
    return %c0_i32, %c0_i32_0 : i32, i32
  }
  func.func @transform_2(%arg0: i32) -> (i32, i32) {
    %c0_i32 = arith.constant 0 : i32
    %c0_i32_0 = arith.constant 0 : i32
    %c0_i32_1 = arith.constant 0 : i32
    return %c0_i32, %c0_i32_0 : i32, i32
  }
  func.func @transform_3(%arg0: i32) -> (i32, i32) {
    %c0_i32 = arith.constant 0 : i32
    %c0_i32_0 = arith.constant 0 : i32
    %c0_i32_1 = arith.constant 0 : i32
    return %c0_i32, %c0_i32_0 : i32, i32
  }
  func.func @transform_4(%arg0: i32) -> (i32, i32) {
    %c0_i32 = arith.constant 0 : i32
    %c0_i32_0 = arith.constant 0 : i32
    %c0_i32_1 = arith.constant 0 : i32
    return %c0_i32, %c0_i32_0 : i32, i32
  }
  func.func @transform_5(%arg0: i32) -> (i32, i32) {
    %c0_i32 = arith.constant 0 : i32
    %c0_i32_0 = arith.constant 0 : i32
    %c0_i32_1 = arith.constant 0 : i32
    return %c0_i32, %c0_i32_0 : i32, i32
  }
  func.func @transform_6(%arg0: i32) -> (i32, i32) {
    %c0_i32 = arith.constant 0 : i32
    %c0_i32_0 = arith.constant 0 : i32
    %c0_i32_1 = arith.constant 0 : i32
    return %c0_i32, %c0_i32_0 : i32, i32
  }
  func.func @transform_7(%arg0: i32) -> (i32, i32) {
    %c0_i32 = arith.constant 0 : i32
    %c0_i32_0 = arith.constant 0 : i32
    %c0_i32_1 = arith.constant 0 : i32
    return %c0_i32, %c0_i32_0 : i32, i32
  }
  func.func @transform_8(%arg0: i32) -> (i32, i32) {
    %c0_i32 = arith.constant 0 : i32
    %c0_i32_0 = arith.constant 0 : i32
    %c0_i32_1 = arith.constant 0 : i32
    return %c0_i32, %c0_i32_0 : i32, i32
  }
  func.func @transform_9(%arg0: i32) -> (i32, i32) {
    %c0_i32 = arith.constant 0 : i32
    %c0_i32_0 = arith.constant 0 : i32
    %c0_i32_1 = arith.constant 0 : i32
    return %c0_i32, %c0_i32_0 : i32, i32
  }
  func.func @transform_10(%arg0: i32) -> (i32, i32) {
    %c0_i32 = arith.constant 0 : i32
    %c0_i32_0 = arith.constant 0 : i32
    %c0_i32_1 = arith.constant 0 : i32
    return %c0_i32, %c0_i32_0 : i32, i32
  }
  func.func @transform_11(%arg0: i32) -> (i32, i32) {
    %c0_i32 = arith.constant 0 : i32
    %c0_i32_0 = arith.constant 0 : i32
    %c0_i32_1 = arith.constant 0 : i32
    return %c0_i32, %c0_i32_0 : i32, i32
  }
  func.func @transform_12(%arg0: i32) -> (i32, i32) {
    %c0_i32 = arith.constant 0 : i32
    %c0_i32_0 = arith.constant 0 : i32
    %c0_i32_1 = arith.constant 0 : i32
    return %c0_i32, %c0_i32_0 : i32, i32
  }
  func.func @transform_13(%arg0: i32) -> (i32, i32) {
    %c0_i32 = arith.constant 0 : i32
    %c0_i32_0 = arith.constant 0 : i32
    %c0_i32_1 = arith.constant 0 : i32
    return %c0_i32, %c0_i32_0 : i32, i32
  }
  func.func @transform_14(%arg0: i32) -> (i32, i32) {
    %c0_i32 = arith.constant 0 : i32
    %c0_i32_0 = arith.constant 0 : i32
    %c0_i32_1 = arith.constant 0 : i32
    return %c0_i32, %c0_i32_0 : i32, i32
  }
  func.func @transform_15(%arg0: i32) -> (i32, i32) {
    %c0_i32 = arith.constant 0 : i32
    %c0_i32_0 = arith.constant 0 : i32
    %c0_i32_1 = arith.constant 0 : i32
    return %c0_i32, %c0_i32_0 : i32, i32
  }
  func.func @transform_16(%arg0: i32) -> (i32, i32) {
    %c0_i32 = arith.constant 0 : i32
    %c0_i32_0 = arith.constant 0 : i32
    %c0_i32_1 = arith.constant 0 : i32
    return %c0_i32, %c0_i32_0 : i32, i32
  }
  func.func @transform_17(%arg0: i32) -> (i32, i32) {
    %c0_i32 = arith.constant 0 : i32
    %c0_i32_0 = arith.constant 0 : i32
    %c0_i32_1 = arith.constant 0 : i32
    return %c0_i32, %c0_i32_0 : i32, i32
  }
  func.func @transform_18(%arg0: i32) -> (i32, i32) {
    %c0_i32 = arith.constant 0 : i32
    %c0_i32_0 = arith.constant 0 : i32
    %c0_i32_1 = arith.constant 0 : i32
    return %c0_i32, %c0_i32_0 : i32, i32
  }
  func.func @transform_19(%arg0: i32) -> (i32, i32) {
    %c0_i32 = arith.constant 0 : i32
    %c0_i32_0 = arith.constant 0 : i32
    %c0_i32_1 = arith.constant 0 : i32
    return %c0_i32, %c0_i32_0 : i32, i32
  }
  func.func @transform_20(%arg0: i32) -> (i32, i32) {
    %c0_i32 = arith.constant 0 : i32
    %c0_i32_0 = arith.constant 0 : i32
    %c0_i32_1 = arith.constant 0 : i32
    return %c0_i32, %c0_i32_0 : i32, i32
  }
  func.func @transform_21(%arg0: i32) -> (i32, i32) {
    %c0_i32 = arith.constant 0 : i32
    %c0_i32_0 = arith.constant 0 : i32
    %c0_i32_1 = arith.constant 0 : i32
    return %c0_i32, %c0_i32_0 : i32, i32
  }
  func.func @transform_22(%arg0: i32) -> (i32, i32) {
    %c0_i32 = arith.constant 0 : i32
    %c0_i32_0 = arith.constant 0 : i32
    %c0_i32_1 = arith.constant 0 : i32
    return %c0_i32, %c0_i32_0 : i32, i32
  }
  func.func @transform_23(%arg0: i32) -> (i32, i32) {
    %c0_i32 = arith.constant 0 : i32
    %c0_i32_0 = arith.constant 0 : i32
    %c0_i32_1 = arith.constant 0 : i32
    return %c0_i32, %c0_i32_0 : i32, i32
  }
  func.func @transform_24(%arg0: i32) -> (i32, i32) {
    %c0_i32 = arith.constant 0 : i32
    %c0_i32_0 = arith.constant 0 : i32
    %c0_i32_1 = arith.constant 0 : i32
    return %c0_i32, %c0_i32_0 : i32, i32
  }
  func.func @transform_25(%arg0: i32) -> (i32, i32, i32) {
    %c0_i32 = arith.constant 0 : i32
    %c0_i32_0 = arith.constant 0 : i32
    %c0_i32_1 = arith.constant 0 : i32
    return %arg0, %c0_i32, %c0_i32_0 : i32, i32, i32
  }
  func.func @transform_26(%arg0: i32) -> (i32, i32) {
    %c0_i32 = arith.constant 0 : i32
    %c0_i32_0 = arith.constant 0 : i32
    return %arg0, %c0_i32 : i32, i32
  }
  func.func @transform_27(%arg0: i32) -> (i32, i32) {
    %c0_i32 = arith.constant 0 : i32
    %c0_i32_0 = arith.constant 0 : i32
    return %arg0, %c0_i32 : i32, i32
  }
}

</mosaic_0001>

<bundles_post_ra>
// kernel: mca_forward.1
= control target key start
LH: loop header
LB: loop body
LE: loop exit
PB: predicated region body
PF: predicated region fallthrough
CT: control target
= control target key end

     0   :  { %s3393_s0 = inlined_call_operand.vmem [shape: s32[2,16], index: 0, kind: input, shape index: {}]   ;;  %s3394_s1 = inlined_call_operand.vmem [shape: bf16[28,8], index: 1, kind: input, shape index: {}]   ;;  %s3395_s2 = inlined_call_operand.vmem [shape: bf16[24,16], index: 2, kind: input, shape index: {}]   ;;  %s3396_s3 = inlined_call_operand.vmem [shape: f32[1,16], index: 3, kind: input, shape index: {}]   ;;  %s3397_s4 = inlined_call_operand.vmem [shape: f32[1,16], index: 4, kind: input, shape index: {}]   ;;  %s3398_s5 = inlined_call_operand.vmem [shape: f32[1,16], index: 5, kind: input, shape index: {}]   ;;  %s3399_s6 = inlined_call_operand.vmem [shape: bf16[40,16], index: 6, kind: input, shape index: {}]   ;;  %s3400_s7 = inlined_call_operand.vmem [shape: f32[1,16], index: 7, kind: input, shape index: {}]   ;;  %s3401_s8 = inlined_call_operand.vmem [shape: f32[1,16], index: 8, kind: input, shape index: {}]   ;;  %s3402_s9 = inlined_call_operand.vmem [shape: f32[1,16], index: 9, kind: input, shape index: {}]   ;;  %s3403_s10 = inlined_call_operand.vmem [shape: bf16[8,64], index: 10, kind: input, shape index: {}]   ;;  %s3404_s11 = inlined_call_operand.vmem [shape: f32[1,64], index: 11, kind: input, shape index: {}]   ;;  %s3405_s12 = inlined_call_operand.vmem [shape: bf16[64,4], index: 12, kind: input, shape index: {}]   ;;  %s3406_s13 = inlined_call_operand.vmem [shape: bf16[16,64], index: 13, kind: input, shape index: {}]   ;;  %s3407_s14 = inlined_call_operand.vmem [shape: f32[1,64], index: 14, kind: input, shape index: {}]   ;;  %s3408_s15 = inlined_call_operand.vmem [shape: bf16[64,4], index: 15, kind: input, shape index: {}]   ;;  %s3409_s16 = inlined_call_operand.vmem [shape: bf16[16,64], index: 16, kind: input, shape index: {}]   ;;  %s3410_s17 = inlined_call_operand.vmem [shape: f32[1,64], index: 17, kind: input, shape index: {}]   ;;  %s3411_s18 = inlined_call_operand.vmem [shape: bf16[64,4], index: 18, kind: input, shape index: {}]   ;;  %s3412_s19 = inlined_call_operand.vmem [shape: bf16[160,64], index: 19, kind: input, shape index: {}]   ;;  %s3413_s20 = inlined_call_operand.vmem [shape: f32[1,64], index: 20, kind: input, shape index: {}]   ;;  %s3414_s21 = inlined_call_operand.vmem [shape: bf16[64,32], index: 21, kind: input, shape index: {}]   ;;  %s3415_s22 = inlined_call_operand.vmem [shape: f32[1,32], index: 22, kind: input, shape index: {}]   ;;  %s3416_s23 = inlined_call_operand.vmem [shape: bf16[32,12], index: 23, kind: input, shape index: {}]   ;;  %s3417_s24 = inlined_call_operand.vmem [shape: f32[1,12], index: 24, kind: input, shape index: {}]   ;;  %s3418_s25 = inlined_call_operand.vmem [shape: f32[2,16,12], index: 25, kind: output, shape index: {0}]   ;;  %s3419_s26 = inlined_call_operand.hbm [shape: f32[2,32], index: 26, kind: output, shape index: {1}]   ;;  %s3420_s27 = inlined_call_operand.vmem [shape: f32[2,12], index: 27, kind: output, shape index: {2}]  }
   0x1   :  { %3424 = sst [smem:[#allocation5_spill]] %s3393_s0 }
   0x2   :  { %3425 = sst [smem:[#allocation6_spill]] %s3394_s1 }
   0x3   :  { %3426 = sst [smem:[#allocation7_spill]] %s3395_s2 }
   0x4   :  { %3427 = sst [smem:[#allocation8_spill]] %s3396_s3 }
   0x5   :  { %3428 = sst [smem:[#allocation9_spill]] %s3397_s4 }
   0x6   :  { %3429 = sst [smem:[#allocation10_spill]] %s3398_s5 }
   0x7   :  { %3430 = sst [smem:[#allocation11_spill]] %s3399_s6 }
   0x8   :  { %3431 = sst [smem:[#allocation12_spill]] %s3400_s7 }
   0x9   :  { %3432 = sst [smem:[#allocation13_spill]] %s3401_s8 }
   0xa   :  { %3433 = sst [smem:[#allocation14_spill]] %s3402_s9 }
   0xb   :  { %3434 = sst [smem:[#allocation15_spill]] %s3403_s10 }
   0xc   :  { %3435 = sst [smem:[#allocation16_spill]] %s3404_s11 }
   0xd   :  { %v86_v0 = vlaneseq  ;;  %s3436_s8 = sld [smem:[#allocation6_spill]]  ;;  %s3437_s5 = sld [smem:[#allocation5_spill]]  ;;  %vm146_vm0 = vcmask 1045504   ;;  %v2707_v10 = vmov 0.0  }
   0xf   :  { %v2866_v3 = vshrl.u32 %v86_v0, 7 }
  0x11   :  { %v101_v5 = vsub.s32 1, %v2866_v3  ;;  %v90_v6 = vsub.s32 0, %v2866_v3 }
  0x13   :  { %v2582_v1 = vld [vmem:[%s3436_s8] sm:$0xff]   ;;  %v2583_v4 = vld [vmem:[%s3436_s8 + $0x8] sm:$0x3f]  }
  0x14   :  { %v85_v2 = vld [vmem:[%s3437_s5] sm:$0x3]  ;;  %2364 = vmatprep.subr.bf16.mxu0 %v2582_v1  ;;  %v148_v7 = vsel %vm146_vm0, %v2583_v4, 0 }
  0x15   :  { %2365 = vmatpush3.bf16.msra.mxu0 %v2582_v1  ;;  %v102_v8 = vrot.slane %v85_v2, %v101_v5  ;;  %v91_v9 = vrot.slane %v85_v2, %v90_v6 }
  0x16   :  { %2500 = vmatprep.subr.msk.bf16.mxu0 %vm146_vm0, %v2583_v4 }
  0x17   :  { %104 = vbcast.lane.b32.xlu1 %v102_v8, 256  ;;  %93 = vbcast.lane.b32.xlu0 %v91_v9, 256 }
  0x19   :  { %2367 = vmatpush3.bf16.msra.mxu0 %v148_v7 }
  0x1a   :  { %2396 = vmatprep.subr.bf16.mxu0 %v2707_v10 }
  0x1b   :  { %108 = vbcast.lane.b32.xlu1 %v102_v8, 264  ;;  %97 = vbcast.lane.b32.xlu0 %v91_v9, 264 }
  0x1c   :  { %33 = vsyncpa [#allocation3], 0  ;;  %v87_v11 = vand.u32 127, %v86_v0  ;;  %vm139_vm5 = vcmask 228352   ;;  %s3438_s1 = sld [smem:[#allocation15_spill]]  ;;  %vm237_vm6 = vcmask 1043456  }
  0x1d   :  { %vm203_vm7 = vcmask 1041408   ;;  %vm230_vm8 = vcmask 64512   ;;  %vm644_vm9 = vcmask 1046528   ;;  %s2708_s6 = smov 8   ;;  %s2709_s11 = smov 16   ;;  %v2584_v2 = vld [vmem:[%s3405_s12] sm:$0xff]  }
  0x1e   :  { %v2585_v4 = vld [vmem:[%s3405_s12 + $0x8] sm:$0xff]   ;;  %v2586_v5 = vld [vmem:[%s3405_s12 + $0x10] sm:$0xff]   ;;  %v2587_v6 = vld [vmem:[%s3405_s12 + $0x18] sm:$0xff]   ;;  %s3439_s10 = sld [smem:[#allocation16_spill]]  ;;  %vm328_vm10 = vcmask 523264   ;;  %vm384_vm11 = vcmask 31744  }
  0x1f   :  { %vm2710_vm12 = vmmov 0   ;;  %vm1262_vm13 = vcmask 1044480   ;;  %s2711_s2 = smov 24   ;;  %s2712_s3 = smov 32   ;;  %vm505_vm14 = vcmask 130048   ;;  %vm638_vm15 = vcmask 195584  }
  0x20   :  { %s3441_s5 = sld [smem:[#allocation8_spill]]  ;;  %s3444_s12 = sld [smem:[#allocation11_spill]] }
  0x21   :  { %s3446_s28 = sld [smem:[#allocation13_spill]] }
  0x22   :  { %v222_v22 = vld [vmem:[%s3438_s1] sm:$0xf]  ;;  %s3440_s1 = sld [smem:[#allocation7_spill]] }
  0x23   :  { %2501 = vmatprep.subr.msk.bf16.mxu1 %vm237_vm6, %v222_v22  ;;  %v239_v23 = vsel %vm237_vm6, %v222_v22, 0 }
  0x24   :  { %2373 = vmatpush3.bf16.msra.mxu1 %v239_v23  ;;  %v2231_v7 = vld [vmem:[%s3439_s10] ss:$0 sm:$0xff]  ;;  %s3442_s10 = sld [smem:[#allocation9_spill]] }
  0x25   :  { %2378 = vmatprep.subr.bf16.mxu1 %v2584_v2 }
  0x89   :  { %v105_v12 = vpop.permute.xlu1 %104  ;;  %v94_v13 = vpop.permute.xlu0 %93 }
  0x8a   :  { %vm112_vm1 = vcmp.eq.s32.totalorder %v87_v11, %v105_v12  ;;  %vm110_vm2 = vcmp.eq.s32.totalorder %v87_v11, %v94_v13 }
  0x8b   :  { %v2225_v16 = vsel %vm112_vm1, 1.0, %v2707_v10  ;;  %v2223_v17 = vsel %vm110_vm2, 1.0, %v2707_v10  ;;  %vm1337_vm1 = vcmask 326656   ;;  %vm1260_vm2 = vcmask 392192  }
  0x8d   :  { %v109_v14 = vpop.permute.xlu1 %108  ;;  %v98_v15 = vpop.permute.xlu0 %97 }
  0x8e   :  { %vm113_vm3 = vcmp.eq.s32.totalorder %v87_v11, %v109_v14  ;;  %vm111_vm4 = vcmp.eq.s32.totalorder %v87_v11, %v98_v15 }
  0x8f   :  { %v2226_v18 = vsel %vm113_vm3, 1.0, %v2707_v10  ;;  %v2224_v19 = vsel %vm111_vm4, 1.0, %v2707_v10  ;;  %vm1905_vm3 = vcmask 785408   ;;  %vm1891_vm4 = vcmask 97280  }
  0x90   :  { %v123_v20 = vpack.c.bf16 %v2226_v18, %v2225_v16  ;;  %v122_v21 = vpack.c.bf16 %v2224_v19, %v2223_v17 }
  0x92   :  { %2368 = vmatprep.mubr.msk.bf16.mxu0 %vm139_vm5, %v122_v21 }
  0x93   :  { %2369 = vmatmul.mubr.msk.bf16.vlgmr.msra.gmra.mrb[0].mxu0 %vm139_vm5, %v123_v20  ;;  %vm2124_vm5 = vcmask 254976  }
  0x94   :  { %2398 = vmatprep.mubr.msk.bf16.mxu0 %vm2710_vm12, %v2707_v10 }
 0x166   :  { %v2370_v24 = vpop.f32.mrb[0].mxu0 }
 0x167   :  { %v207_v25 = vrot.slane %v2370_v24, 6  ;;  %v184_v26 = vpop.f32.mrb[1].mxu0 }
 0x168   :  { %v204_v27 = vrot.slane %v184_v26, 6  ;;  %v2371_v28 = vpop.f32.mrb[2].mxu0 }
 0x169   :  { %v2886_v29 = vsel %vm203_vm7, 0.0, %v207_v25  ;;  %v208_v30 = vrot.slane %v2371_v28, 6  ;;  %v221_v31 = vpack.c.bf16 %v2371_v28, %v2370_v24  ;;  %v187_v32 = vpop.f32.mrb[3].mxu0 }
 0x16a   :  { %v205_v33 = vrot.slane %v187_v32, 6  ;;  %v2888_v34 = vpack.c.bf16 %v187_v32, %v184_v26  ;;  %v2891_v35 = vsel %vm203_vm7, 0.0, %v204_v27  ;;  %v650_v38 = vrot.slane %v2886_v29, 1 }
 0x16b   :  { %v2894_v36 = vsel %vm203_vm7, %v207_v25, %v208_v30  ;;  %v2897_v37 = vsel %vm203_vm7, %v208_v30, 0.0  ;;  %2397 = vmatpush3.bf16.msra.mxu0 %v221_v31  ;;  %v678_v49 = vrot.slane %v2886_v29, 2  ;;  %v673_v50 = vrot.slane %v2891_v35, 2 }
 0x16c   :  { %v2901_v39 = vsel %vm203_vm7, %v204_v27, %v205_v33  ;;  %v2904_v40 = vsel %vm203_vm7, %v205_v33, 0.0  ;;  %2374 = vmatprep.mubr.msk.bf16.mxu1 %vm230_vm8, %v2888_v34  ;;  %v651_v41 = vrot.slane %v2894_v36, 1  ;;  %v653_v42 = vrot.slane %v2897_v37, 1 }
 0x16d   :  { %2375 = vmatmul.mubr.msk.bf16.vlgmr.msra.gmra.mrb[0].mxu1 %vm230_vm8, %v221_v31  ;;  %v648_v43 = vrot.slane %v2904_v40, 1  ;;  %v676_v44 = vrot.slane %v2904_v40, 2  ;;  %v679_v45 = vrot.slane %v2894_v36, 2  ;;  %v674_v46 = vrot.slane %v2901_v39, 2 }
 0x16e   :  { %v654_v47 = vsel %vm644_vm9, %v651_v41, %v653_v42  ;;  %v652_v48 = vsel %vm644_vm9, %v650_v38, %v651_v41  ;;  %v681_v53 = vrot.slane %v2897_v37, 2  ;;  %v646_v57 = vrot.slane %v2901_v39, 1  ;;  %2379 = vmatpush3.bf16.msra.mxu1 %v2584_v2 }
 0x16f   :  { %v2522_v51 = vpack.i.bf16 %v653_v42, %v654_v47  ;;  %v2517_v52 = vpack.i.bf16 %v652_v48, %v648_v43  ;;  %v680_v54 = vsel %vm146_vm0, %v678_v49, %v679_v45  ;;  %v675_v55 = vsel %vm146_vm0, %v673_v50, %v674_v46  ;;  %2380 = vmatprep.subr.bf16.mxu1 %v2585_v4 }
 0x170   :  { %v677_v56 = vsel %vm146_vm0, %v674_v46, %v676_v44  ;;  %v645_v58 = vrot.slane %v2891_v35, 1  ;;  %v2527_v59 = vpack.i.bf16 %v680_v54, %v676_v44  ;;  %v682_v61 = vsel %vm146_vm0, %v679_v45, %v681_v53 }
 0x171   :  { %2523 = vrot.lane.b32.xlu0 %v2522_v51, %s2708_s6  ;;  %2518 = vrot.lane.b32.xlu1 %v2517_v52, %s2708_s6  ;;  %v2537_v60 = vpack.i.bf16 %v677_v56, %v675_v55  ;;  %v649_v63 = vsel %vm644_vm9, %v646_v57, %v648_v43  ;;  %v2542_v0 = vpack.i.bf16 %v681_v53, %v682_v61  ;;  %vm1258_vm0 = vcmask 261120  }
 0x172   :  { %v647_v62 = vsel %vm644_vm9, %v645_v58, %v646_v57  ;;  %2381 = vmatpush3.bf16.msra.mxu1 %v2585_v4 }
 0x173   :  { %v2532_v1 = vpack.i.bf16 %v649_v63, %v647_v62  ;;  %2382 = vmatprep.subr.bf16.mxu1 %v2586_v5 }
 0x175   :  { %2528 = vrot.lane.b32.xlu0 %v2527_v59, %s2709_s11  ;;  %2538 = vrot.lane.b32.xlu1 %v2537_v60, %s2709_s11 }
 0x176   :  { %2383 = vmatpush3.bf16.msra.mxu1 %v2586_v5 }
 0x177   :  { %2384 = vmatprep.subr.bf16.mxu1 %v2587_v6 }
 0x179   :  { %2543 = vrot.lane.b32.xlu1 %v2542_v0, %s2709_s11  ;;  %2533 = vrot.lane.b32.xlu0 %v2532_v1, %s2708_s6 }
 0x17a   :  { %2385 = vmatpush3.bf16.msra.mxu1 %v2587_v6 }
 0x17b   :  { %2390 = vmatprep.subr.bf16.mxu1 %v2707_v10 }
 0x240   :  { %v2376_v8 = vpop.f32.mrb[0].mxu1 }
 0x241   :  { %v284_v9 = vadd.f32 %v2376_v8, %v2231_v7  ;;  %v275_v11 = vpop.f32.mrb[1].mxu1 }
 0x242   :  { %v276_v12 = vadd.f32 %v2231_v7, %v275_v11  ;;  %v2377_v13 = vpop.f32.mrb[2].mxu1 }
 0x243   :  { %2619 = vtanh.f32 %v284_v9  ;;  %v287_v14 = vadd.f32 %v2377_v13, %v2231_v7  ;;  %v278_v15 = vpop.f32.mrb[3].mxu1 }
 0x244   :  { %2621 = vtanh.f32 %v276_v12  ;;  %v279_v16 = vadd.f32 %v2231_v7, %v278_v15 }
 0x245   :  { %2623 = vtanh.f32 %v287_v14 }
 0x246   :  { %2625 = vtanh.f32 %v279_v16 }
 0x24d   :  { %v2620_v17 = vpop.eup %2619 }
 0x24e   :  { %v2622_v18 = vpop.eup %2621 }
 0x24f   :  { %v2624_v19 = vpop.eup %2623 }
 0x250   :  { %v2626_v20 = vpop.eup %2625  ;;  %v295_v21 = vpack.c.bf16 %v2624_v19, %v2620_v17 }
 0x251   :  { %v294_v22 = vpack.c.bf16 %v2626_v20, %v2622_v18 }
 0x253   :  { %2386 = vmatprep.mubr.msk.bf16.mxu1 %vm328_vm10, %v294_v22 }
 0x254   :  { %2387 = vmatmul.mubr.msk.bf16.vlgmr.msra.gmra.mrb[4].mxu1 %vm328_vm10, %v295_v21 }
 0x255   :  { %2391 = vmatpush3.bf16.msra.mxu1 %v2888_v34  ;;  %2392 = vmatprep.mubr.msk.bf16.mxu1 %vm2710_vm12, %v2707_v10 }
 0x327   :  { %v2388_v23 = vpop.f32.mrb[4].mxu1 }
 0x328   :  { %v369_v24 = vpop.f32.mrb[5].mxu1  ;;  %v394_v26 = vsel %vm384_vm11, %v2388_v23, -inf }
 0x329   :  { %v2389_v25 = vpop.f32.mrb[6].mxu1  ;;  %v385_v30 = vsel %vm384_vm11, %v369_v24, -inf }
 0x32a   :  { %v395_v27 = vsel %vm384_vm11, %v2389_v25, -inf  ;;  %v372_v28 = vpop.f32.mrb[7].mxu1 }
 0x32b   :  { %v396_v31 = vmax.f32 %v394_v26, %v395_v27  ;;  %v386_v32 = vsel %vm384_vm11, %v372_v28, -inf  ;;  %v1269_v26 = vrot.slane %v2894_v36, 3  ;;  %v1271_v27 = vrot.slane %v2897_v37, 3 }
 0x32c   :  { %v387_v33 = vmax.f32 %v385_v30, %v386_v32  ;;  %v1291_v32 = vrot.slane %v2894_v36, 4 }
 0x32d   :  { %v397_v38 = vrot.slane %v396_v31, 4 }
 0x32e   :  { %v388_v41 = vrot.slane %v387_v33, 4 }
 0x32f   :  { %v398_v42 = vmax.f32 %v396_v31, %v397_v38  ;;  %v1272_v31 = vsel %vm1262_vm13, %v1269_v26, %v1271_v27  ;;  %v1290_v38 = vrot.slane %v2886_v29, 4 }
 0x330   :  { %v389_v43 = vmax.f32 %v387_v33, %v388_v41  ;;  %v1293_v33 = vrot.slane %v2897_v37, 4 }
 0x331   :  { %v399_v34 = vrot.slane %v398_v42, 2 }
 0x332   :  { %v390_v44 = vrot.slane %v389_v43, 2 }
 0x333   :  { %v400_v45 = vmax.f32 %v398_v42, %v399_v34  ;;  %v1292_v42 = vsel %vm237_vm6, %v1290_v38, %v1291_v32 }
 0x334   :  { %v391_v46 = vmax.f32 %v389_v43, %v390_v44  ;;  %v1294_v43 = vsel %vm237_vm6, %v1291_v32, %v1293_v33  ;;  %v1264_v44 = vrot.slane %v2901_v39, 3 }
 0x335   :  { %v401_v47 = vrot.slane %v400_v45, 1  ;;  %v2562_v34 = vpack.i.bf16 %v1294_v43, %v1292_v42 }
 0x336   :  { %v392_v48 = vrot.slane %v391_v46, 1 }
 0x337   :  { %v402_v49 = vmax.f32 %v400_v45, %v401_v47  ;;  %v1266_v45 = vrot.slane %v2904_v40, 3 }
 0x338   :  { %v393_v50 = vmax.f32 %v391_v46, %v392_v48  ;;  %v1263_v46 = vrot.slane %v2891_v35, 3 }
 0x339   :  { %v405_v51 = vsub.f32 %v2388_v23, %v402_v49  ;;  %v406_v52 = vsub.f32 %v2389_v25, %v402_v49  ;;  %v2974_v25 = vld [vmem:[%s3440_s1] sm:$0xff]   ;;  %v1267_v48 = vsel %vm1262_vm13, %v1264_v44, %v1266_v45  ;;  %v1286_v49 = vrot.slane %v2901_v39, 4 }
 0x33a   :  { %v403_v53 = vsub.f32 %v369_v24, %v393_v50  ;;  %v404_v54 = vsub.f32 %v372_v28, %v393_v50  ;;  %2402 = vmatprep.subr.bf16.mxu1 %v2974_v25  ;;  %v1268_v28 = vrot.slane %v2886_v29, 3  ;;  %v1265_v47 = vsel %vm1262_vm13, %v1263_v46, %v1264_v44 }
 0x33b   :  { %v411_v55 = vmul.f32 1.442695, %v405_v51  ;;  %v413_v56 = vmul.f32 1.442695, %v406_v52  ;;  %v1288_v50 = vrot.slane %v2904_v40, 4  ;;  %v1285_v51 = vrot.slane %v2891_v35, 4 }
 0x33c   :  { %v407_v57 = vmul.f32 1.442695, %v403_v53  ;;  %v409_v58 = vmul.f32 1.442695, %v404_v54  ;;  %v1270_v30 = vsel %vm1262_vm13, %v1268_v28, %v1269_v26  ;;  %v2547_v52 = vpack.i.bf16 %v1267_v48, %v1265_v47  ;;  %v2590_v47 = vld [vmem:[%s3406_s13] sm:$0xff]   ;;  %s3445_s13 = sld [smem:[#allocation12_spill]] }
 0x33d   :  { %2627 = vpow2.f32 %v411_v55  ;;  %v2552_v41 = vpack.i.bf16 %v1272_v31, %v1270_v30  ;;  %v1287_v53 = vsel %vm237_vm6, %v1285_v51, %v1286_v49  ;;  %v1289_v54 = vsel %vm237_vm6, %v1286_v49, %v1288_v50  ;;  %2410 = vmatprep.subr.bf16.mxu0 %v2590_v47 }
 0x33e   :  { %2629 = vpow2.f32 %v413_v56  ;;  %v2557_v55 = vpack.i.bf16 %v1289_v54, %v1287_v53  ;;  %v2524_v56 = vpop.permute.xlu0 %2523 }
 0x33f   :  { %2631 = vpow2.f32 %v407_v57 }
 0x340   :  { %2633 = vpow2.f32 %v409_v58  ;;  %v2519_v58 = vpop.permute.xlu1 %2518 }
 0x342   :  { %v2529_v57 = vpop.permute.xlu0 %2528 }
 0x347   :  { %v2628_v59 = vpop.eup %2627 }
 0x348   :  { %v2630_v60 = vpop.eup %2629  ;;  %v424_v61 = vsel %vm384_vm11, %v2628_v59, 0.0 }
 0x349   :  { %v2632_v62 = vpop.eup %2631  ;;  %v425_v63 = vsel %vm384_vm11, %v2630_v60, 0.0 }
 0x34a   :  { %v2634_v0 = vpop.eup %2633  ;;  %v426_v1 = vadd.f32 %v425_v63, %v424_v61  ;;  %v415_v2 = vsel %vm384_vm11, %v2632_v62, 0.0  ;;  %v2520_v63 = vunpack.i.l.bf16 %v2519_v58 }
 0x34b   :  { %v416_v4 = vsel %vm384_vm11, %v2634_v0, 0.0 }
 0x34c   :  { %v427_v5 = vrot.slane %v426_v1, 4  ;;  %v417_v6 = vadd.f32 %v416_v4, %v415_v2  ;;  %v2530_v2 = vunpack.i.l.bf16 %v2529_v57 }
 0x34e   :  { %v428_v7 = vadd.f32 %v427_v5, %v426_v1  ;;  %v418_v8 = vrot.slane %v417_v6, 4 }
 0x350   :  { %v419_v9 = vadd.f32 %v418_v8, %v417_v6  ;;  %v429_v11 = vrot.slane %v428_v7, 2 }
 0x352   :  { %v430_v12 = vadd.f32 %v429_v11, %v428_v7  ;;  %v420_v13 = vrot.slane %v419_v9, 2  ;;  %v703_v11 = vsel %vm230_vm8, %v2904_v40, %v2520_v63  ;;  %v2246_v63 = vld [vmem:[%s3441_s5] ss:$0 sm:$0xff]  ;;  %s2718_s5 = smov 4  }
 0x354   :  { %v431_v14 = vrot.slane %v430_v12, 1  ;;  %v421_v15 = vadd.f32 %v420_v13, %v419_v9  ;;  %v2526_v9 = vunpack.i.h.bf16 %v2524_v56 }
 0x356   :  { %v432_v16 = vadd.f32 %v431_v14, %v430_v12  ;;  %v422_v17 = vrot.slane %v421_v15, 1  ;;  %v2525_v12 = vunpack.i.l.bf16 %v2524_v56 }
 0x358   :  { %2635 = vrcp.f32 %v432_v16  ;;  %v423_v18 = vadd.f32 %v422_v17, %v421_v15  ;;  %v2521_v16 = vunpack.i.h.bf16 %v2519_v58  ;;  %v706_v17 = vsel %vm230_vm8, %v2897_v37, %v2526_v9 }
 0x35a   :  { %2637 = vrcp.f32 %v423_v18  ;;  %v2531_v18 = vunpack.i.h.bf16 %v2529_v57  ;;  %v704_v32 = vsel %vm230_vm8, %v2886_v29, %v2521_v16 }
 0x35c   :  { %v3035_v33 = vsel %vm505_vm14, %v704_v32, %v2531_v18  ;;  %v2591_v32 = vld [vmem:[%s3408_s15] sm:$0xff]  }
 0x35d   :  { %v724_v29 = vrot.slane %v3035_v33, 1 }
 0x362   :  { %v2636_v19 = vpop.eup %2635 }
 0x363   :  { %v2961_v20 = vmul.f32 %v2636_v19, %v2628_v59  ;;  %v2963_v21 = vmul.f32 %v2636_v19, %v2630_v60  ;;  %v2534_v59 = vpop.permute.xlu0 %2533  ;;  %v2539_v60 = vpop.permute.xlu1 %2538 }
 0x364   :  { %v2638_v22 = vpop.eup %2637  ;;  %v2536_v61 = vunpack.i.h.bf16 %v2534_v59  ;;  %v2541_v4 = vunpack.i.h.bf16 %v2539_v60  ;;  %v2540_v5 = vunpack.i.l.bf16 %v2539_v60 }
 0x365   :  { %471 = vxpose.xlu1.b32.start [1/2] (short) (narrow) %v2961_v20, 8  ;;  %v2966_v23 = vmul.f32 %v2638_v22, %v2632_v62  ;;  %v2968_v24 = vmul.f32 %v2638_v22, %v2634_v0  ;;  %v2535_v62 = vunpack.i.l.bf16 %v2534_v59  ;;  %v705_v22 = vsel %vm230_vm8, %v2894_v36, %v2525_v12  ;;  %v2589_v36 = vld [vmem:[%s3440_s1 + $0x8] ss:$0 sps:$4 sm:$0xff]   ;;  %s3443_s1 = sld [smem:[#allocation10_spill]] }
 0x366   :  { %v702_v0 = vsel %vm230_vm8, %v2901_v39, %v2536_v61  ;;  %v709_v39 = vsel %vm505_vm14, %v703_v11, %v2530_v2 }
 0x367   :  { %439 = vxpose.xlu0.b32.start [1/2] (short) (narrow) %v2966_v23, 8  ;;  %v701_v1 = vsel %vm230_vm8, %v2891_v35, %v2535_v62  ;;  %v2544_v6 = vpop.permute.xlu1 %2543  ;;  %v3012_v7 = vsel %vm505_vm14, %v702_v0, %v2541_v4  ;;  %v722_v19 = vrot.slane %v709_v39, 1  ;;  %v2247_v4 = vld [vmem:[%s3442_s10] ss:$0 sm:$0xff] }
 0x368   :  { %v3015_v8 = vsel %vm505_vm14, %v701_v1, %v2540_v5  ;;  %v2546_v13 = vunpack.i.h.bf16 %v2544_v6  ;;  %v2545_v35 = vunpack.i.l.bf16 %v2544_v6  ;;  %v720_v14 = vrot.slane %v3012_v7, 1 }
 0x369   :  { %472 = vxpose.xlu1.b32.end [2/2] (short) (narrow) %v2963_v21, 8  ;;  %v719_v15 = vrot.slane %v3015_v8, 1 }
 0x36a   :  { %v712_v40 = vsel %vm505_vm14, %v706_v17, %v2546_v13  ;;  %v3028_v27 = vsel %vm505_vm14, %v705_v22, %v2545_v35  ;;  %v723_v31 = vsel %vm644_vm9, %v720_v14, %v722_v19 }
 0x36b   :  { %440 = vxpose.xlu0.b32.end [2/2] (short) (narrow) %v2968_v24, 8  ;;  %v721_v30 = vsel %vm644_vm9, %v719_v15, %v720_v14  ;;  %v725_v42 = vrot.slane %v3028_v27, 1  ;;  %v2248_v15 = vld [vmem:[%s3443_s1] ss:$0 sm:$0xff] }
 0x36c   :  { %v733_v43 = vpack.c.bf16 %v723_v31, %v721_v30 }
 0x36d   :  { %v726_v44 = vsel %vm644_vm9, %v724_v29, %v725_v42 }
 0x387   :  { %2553 = vrot.lane.b32.xlu1 %v2552_v41, %s2711_s2  ;;  %v727_v41 = vrot.slane %v712_v40, 1 }
 0x389   :  { %v728_v45 = vsel %vm644_vm9, %v725_v42, %v727_v41  ;;  %v2595_v41 = vld [vmem:[%s3444_s12] sm:$0xff]  }
 0x38a   :  { %v734_v46 = vpack.c.bf16 %v728_v45, %v726_v44  ;;  %v2249_v42 = vld [vmem:[%s3407_s14] ss:$0 sm:$0xff] }
 0x38b   :  { %2563 = vrot.lane.b32.xlu1 %v2562_v34, %s2712_s3  ;;  %v754_v34 = vsel %vm237_vm6, %v2589_v36, 0 }
 0x394   :  { %2548 = vrot.lane.b32.xlu0 %v2547_v52, %s2711_s2 }
 0x398   :  { %2558 = vrot.lane.b32.xlu0 %v2557_v55, %s2712_s3 }
 0x3e5   :  { %v487_v26 = vpop.trf.xlu1 }
 0x3e6   :  { %v504_v28 = vpack.c.bf16 %v487_v26, %v487_v26 }
 0x3e7   :  { %v455_v37 = vpop.trf.xlu0 }
 0x3e8   :  { %v503_v38 = vpack.c.bf16 %v455_v37, %v455_v37  ;;  %2399 = vmatmul.mubr.msk.bf16.vlgmr.msra.gmra.mrb[4].mxu0 %vm505_vm14, %v504_v28  ;;  %v2592_v37 = vld [vmem:[%s3408_s15 + $0x8] sm:$0xff]  }
 0x3e9   :  { %2411 = vmatpush3.bf16.msra.mxu0 %v2590_v47 }
 0x3ea   :  { %2393 = vmatmul.mubr.msk.bf16.vlgmr.msra.gmra.mrb[8].mxu1 %vm505_vm14, %v503_v38  ;;  %2428 = vmatprep.subr.bf16.mxu0 %v2707_v10  ;;  %v2593_v38 = vld [vmem:[%s3408_s15 + $0x10] sm:$0xff]  }
 0x3eb   :  { %2403 = vmatpush3.bf16.msra.mxu1 %v2974_v25  ;;  %2406 = vmatprep.mubr.msk.bf16.mxu1 %vm638_vm15, %v733_v43  ;;  %v2713_v25 = vmov 1983009808  }
 0x3ec   :  { %2502 = vmatprep.subr.msk.bf16.mxu1 %vm237_vm6, %v2589_v36  ;;  %v593_v48 = vunpack.c.l.s4 %v2713_v25  ;;  %v2594_v36 = vld [vmem:[%s3408_s15 + $0x18] sm:$0xff]  }
 0x3ee   :  { %v594_v49 = vunpack.c.0.s8 %v593_v48 }
 0x3ef   :  { %2405 = vmatpush3.bf16.msra.mxu1 %v754_v34 }
 0x3f0   :  { %v3056_v50 = vsub.s32 %v594_v49, %v2866_v3  ;;  %2416 = vmatprep.subr.bf16.mxu1 %v2591_v32 }
 0x3f2   :  { %2407 = vmatmul.mubr.msk.bf16.vlgmr.msra.gmra.mrb[12].mxu1 %vm638_vm15, %v734_v46 }
 0x3f3   :  { %2417 = vmatpush3.bf16.msra.mxu1 %v2591_v32 }
 0x3f4   :  { %2418 = vmatprep.subr.bf16.mxu1 %v2592_v37 }
 0x3f7   :  { %2419 = vmatpush3.bf16.msra.mxu1 %v2592_v37 }
 0x3f8   :  { %2420 = vmatprep.subr.bf16.mxu1 %v2593_v38 }
 0x3fb   :  { %2421 = vmatpush3.bf16.msra.mxu1 %v2593_v38 }
 0x3fc   :  { %2422 = vmatprep.subr.bf16.mxu1 %v2594_v36 }
 0x3ff   :  { %2423 = vmatpush3.bf16.msra.mxu1 %v2594_v36 }
 0x400   :  { %2440 = vmatprep.subr.bf16.mxu1 %v2595_v41 }
 0x406   :  { %v2549_v46 = vpop.permute.xlu0 %2548 }
 0x40a   :  { %v2559_v49 = vpop.permute.xlu0 %2558 }
 0x4bb   :  { %v586_v51 = vpop.f32.mrb[4].mxu0 }
 0x4bc   :  { %v3059_v52 = vrot.slane %v586_v51, %v3056_v50  ;;  %v2400_v53 = vpop.f32.mrb[5].mxu0  ;;  %v2551_v51 = vunpack.i.h.bf16 %v2549_v46 }
 0x4bd   :  { %v543_v54 = vpop.f32.mrb[8].mxu1  ;;  %v589_v55 = vpop.f32.mrb[6].mxu0  ;;  %v2550_v53 = vunpack.i.l.bf16 %v2549_v46 }
 0x4be   :  { %v3062_v56 = vrot.slane %v543_v54, %v3056_v50  ;;  %v2394_v57 = vpop.f32.mrb[9].mxu1  ;;  %v2401_v58 = vpop.f32.mrb[7].mxu0  ;;  %v2561_v54 = vunpack.i.h.bf16 %v2559_v49  ;;  %v2560_v55 = vunpack.i.l.bf16 %v2559_v49 }
 0x4bf   :  { %v546_v59 = vpop.f32.mrb[10].mxu1 }
 0x4c0   :  { %v606_v60 = vcombine.low %v3062_v56, %v3059_v52  ;;  %v607_v61 = vcombine.high %v3062_v56, %v3059_v52  ;;  %v2395_v62 = vpop.f32.mrb[11].mxu1  ;;  %v2554_v59 = vpop.permute.xlu1 %2553  ;;  %v2605_v52 = vld [vmem:[%s3412_s19 + $0x10] sm:$0xff]   ;;  %v2606_v56 = vld [vmem:[%s3412_s19 + $0x18] sm:$0xff]  }
 0x4c5   :  { %v2408_v0 = vpop.f32.mrb[12].mxu1 }
 0x4c6   :  { %v814_v1 = vadd.f32 %v2408_v0, %v2246_v63  ;;  %v790_v2 = vpop.f32.mrb[13].mxu1  ;;  %v1308_v0 = vsel %vm638_vm15, %v3012_v7, %v2551_v51  ;;  %v2556_v7 = vunpack.i.h.bf16 %v2554_v59  ;;  %v2267_v51 = vld [vmem:[%s3446_s28] ss:$0 sm:$0xff] }
 0x4c7   :  { %v812_v5 = vadd.f32 %v2246_v63, %v790_v2  ;;  %v2409_v6 = vpop.f32.mrb[14].mxu1 }
 0x4c8   :  { %v818_v9 = vmax.f32 %v814_v1, 0.0  ;;  %v815_v11 = vadd.f32 %v2409_v6, %v2246_v63  ;;  %v793_v12 = vpop.f32.mrb[15].mxu1 }
 0x4c9   :  { %v816_v39 = vmax.f32 %v812_v5, 0.0  ;;  %v813_v13 = vadd.f32 %v2246_v63, %v793_v12  ;;  %v1307_v63 = vsel %vm638_vm15, %v3015_v8, %v2550_v53  ;;  %v2564_v12 = vpop.permute.xlu1 %2563  ;;  %v2555_v8 = vunpack.i.l.bf16 %v2554_v59 }
 0x4ca   :  { %v829_v35 = vmul.f32 %v2247_v4, %v818_v9  ;;  %v819_v14 = vmax.f32 %v815_v11, 0.0  ;;  %v1311_v2 = vsel %vm1258_vm0, %v1307_v63, %v2560_v55  ;;  %v2596_v9 = vld [vmem:[%s3444_s12 + $0x8] sm:$0xff]  }
 0x4cb   :  { %v827_v16 = vmul.f32 %v2247_v4, %v816_v39  ;;  %v817_v17 = vmax.f32 %v813_v13, 0.0  ;;  %v2597_v39 = vld [vmem:[%s3444_s12 + $0x10] ss:$0 sps:$4 sm:$0xff]   ;;  %v2566_v13 = vunpack.i.h.bf16 %v2564_v12  ;;  %s3447_s12 = sld [smem:[#allocation14_spill]] }
 0x4cc   :  { %v830_v18 = vmul.f32 %v2247_v4, %v819_v14  ;;  %v840_v22 = vadd.f32 %v2248_v15, %v829_v35  ;;  %v2565_v35 = vunpack.i.l.bf16 %v2564_v12  ;;  %v1309_v14 = vsel %vm638_vm15, %v3035_v33, %v2555_v8 }
 0x4cd   :  { %v828_v19 = vmul.f32 %v2247_v4, %v817_v17  ;;  %v838_v26 = vadd.f32 %v2248_v15, %v827_v16  ;;  %v1312_v4 = vsel %vm1258_vm0, %v1308_v0, %v2561_v54  ;;  %v1345_v16 = vsel %vm237_vm6, %v2597_v39, 0 }
 0x4ce   :  { %v841_v40 = vadd.f32 %v2248_v15, %v830_v18  ;;  %v1315_v11 = vpack.c.bf16 %v1312_v4, %v1311_v2  ;;  %v1313_v17 = vsel %vm1258_vm0, %v1309_v14, %v2565_v35 }
 0x4cf   :  { %v839_v28 = vadd.f32 %v2248_v15, %v828_v19  ;;  %v1310_v15 = vsel %vm638_vm15, %v3028_v27, %v2556_v7 }
 0x4d0   :  { %v3077_v30 = vpack.c.bf16 %v841_v40, %v840_v22  ;;  %v1314_v18 = vsel %vm1258_vm0, %v1310_v15, %v2566_v13 }
 0x4d1   :  { %v842_v31 = vpack.c.bf16 %v839_v28, %v838_v26  ;;  %v1316_v19 = vpack.c.bf16 %v1314_v18, %v1313_v17  ;;  %v2268_v63 = vld [vmem:[%s3447_s12] ss:$0 sm:$0xff] }
 0x4d3   :  { %2412 = vmatprep.mubr.msk.bf16.mxu0 %vm505_vm14, %v842_v31 }
 0x4d4   :  { %2413 = vmatmul.mubr.msk.bf16.vlgmr.msra.gmra.mrb[8].mxu0 %vm505_vm14, %v3077_v30 }
 0x4d5   :  { %2429 = vmatpush3.bf16.msra.mxu0 %v842_v31  ;;  %2430 = vmatprep.mubr.msk.bf16.mxu0 %vm2710_vm12, %v2707_v10 }
 0x4d6   :  { %2434 = vmatprep.subr.bf16.mxu0 %v2707_v10 }
 0x5a7   :  { %v2414_v43 = vpop.f32.mrb[8].mxu0 }
 0x5a8   :  { %v908_v29 = vadd.f32 %v2414_v43, %v2249_v42  ;;  %v899_v34 = vpop.f32.mrb[9].mxu0 }
 0x5a9   :  { %v900_v44 = vadd.f32 %v2249_v42, %v899_v34  ;;  %v2415_v45 = vpop.f32.mrb[10].mxu0  ;;  %v2266_v34 = vld [vmem:[%s3445_s13] ss:$0 sm:$0xff] }
 0x5aa   :  { %2639 = vtanh.f32 %v908_v29  ;;  %v911_v47 = vadd.f32 %v2415_v45, %v2249_v42  ;;  %v902_v25 = vpop.f32.mrb[11].mxu0 }
 0x5ab   :  { %2641 = vtanh.f32 %v900_v44  ;;  %v903_v48 = vadd.f32 %v2249_v42, %v902_v25 }
 0x5ac   :  { %2643 = vtanh.f32 %v911_v47 }
 0x5ad   :  { %2645 = vtanh.f32 %v903_v48 }
 0x5b4   :  { %v2640_v57 = vpop.eup %2639 }
 0x5b5   :  { %v2642_v58 = vpop.eup %2641 }
 0x5b6   :  { %v2644_v62 = vpop.eup %2643 }
 0x5b7   :  { %v2646_v1 = vpop.eup %2645  ;;  %v919_v5 = vpack.c.bf16 %v2644_v62, %v2640_v57 }
 0x5b8   :  { %v918_v6 = vpack.c.bf16 %v2646_v1, %v2642_v58 }
 0x5ba   :  { %2424 = vmatprep.mubr.msk.bf16.mxu1 %vm328_vm10, %v918_v6 }
 0x5bb   :  { %2425 = vmatmul.mubr.msk.bf16.vlgmr.msra.gmra.mrb[16].mxu1 %vm328_vm10, %v919_v5 }
 0x5bc   :  { %2441 = vmatpush3.bf16.msra.mxu1 %v2595_v41  ;;  %2446 = vmatprep.mubr.msk.bf16.mxu1 %vm1337_vm1, %v1315_v11 }
 0x5bd   :  { %2442 = vmatprep.subr.bf16.mxu1 %v2596_v9 }
 0x5c0   :  { %2443 = vmatpush3.bf16.msra.mxu1 %v2596_v9 }
 0x5c1   :  { %2503 = vmatprep.subr.msk.bf16.mxu1 %vm237_vm6, %v2597_v39 }
 0x5c4   :  { %2445 = vmatpush3.bf16.msra.mxu1 %v1345_v16 }
 0x5c5   :  { %2468 = vmatprep.subr.bf16.mxu1 %v2707_v10 }
 0x5c7   :  { %2447 = vmatmul.mubr.msk.bf16.vlgmr.msra.gmra.mrb[20].mxu1 %vm1337_vm1, %v1316_v19 }
 0x5c8   :  { %2470 = vmatprep.mubr.msk.bf16.mxu1 %vm2710_vm12, %v2707_v10 }
 0x68e   :  { %v2426_v33 = vpop.f32.mrb[16].mxu1 }
 0x68f   :  { %v992_v22 = vpop.f32.mrb[17].mxu1  ;;  %v1016_v40 = vsel %vm384_vm11, %v2426_v33, -inf }
 0x690   :  { %v2427_v27 = vpop.f32.mrb[18].mxu1  ;;  %v1007_v31 = vsel %vm384_vm11, %v992_v22, -inf }
 0x691   :  { %v1017_v26 = vsel %vm384_vm11, %v2427_v27, -inf  ;;  %v995_v28 = vpop.f32.mrb[19].mxu1 }
 0x692   :  { %v1018_v32 = vmax.f32 %v1016_v40, %v1017_v26  ;;  %v1008_v37 = vsel %vm384_vm11, %v995_v28, -inf }
 0x693   :  { %v1009_v38 = vmax.f32 %v1007_v31, %v1008_v37 }
 0x694   :  { %v1019_v36 = vrot.slane %v1018_v32, 4 }
 0x695   :  { %v1010_v41 = vrot.slane %v1009_v38, 4 }
 0x696   :  { %v1020_v42 = vmax.f32 %v1018_v32, %v1019_v36 }
 0x697   :  { %v1011_v43 = vmax.f32 %v1009_v38, %v1010_v41 }
 0x698   :  { %v1021_v29 = vrot.slane %v1020_v42, 2 }
 0x699   :  { %v1012_v44 = vrot.slane %v1011_v43, 2 }
 0x69a   :  { %v1022_v45 = vmax.f32 %v1020_v42, %v1021_v29  ;;  %v2448_v46 = vpop.f32.mrb[20].mxu1 }
 0x69b   :  { %v1013_v47 = vmax.f32 %v1011_v43, %v1012_v44  ;;  %v1405_v25 = vadd.f32 %v2448_v46, %v2266_v34  ;;  %v1381_v48 = vpop.f32.mrb[21].mxu1 }
 0x69c   :  { %v1023_v49 = vrot.slane %v1022_v45, 1  ;;  %v1403_v53 = vadd.f32 %v2266_v34, %v1381_v48  ;;  %v2449_v54 = vpop.f32.mrb[22].mxu1 }
 0x69d   :  { %v1014_v55 = vrot.slane %v1013_v47, 1  ;;  %v1409_v57 = vmax.f32 %v1405_v25, 0.0  ;;  %v1406_v58 = vadd.f32 %v2449_v54, %v2266_v34  ;;  %v1384_v59 = vpop.f32.mrb[23].mxu1 }
 0x69e   :  { %v1024_v62 = vmax.f32 %v1022_v45, %v1023_v49  ;;  %v1407_v0 = vmax.f32 %v1403_v53, 0.0  ;;  %v1404_v1 = vadd.f32 %v2266_v34, %v1384_v59 }
 0x69f   :  { %v1015_v2 = vmax.f32 %v1013_v47, %v1014_v55  ;;  %v1420_v4 = vmul.f32 %v2267_v51, %v1409_v57  ;;  %v1410_v5 = vmax.f32 %v1406_v58, 0.0 }
 0x6a0   :  { %v1027_v6 = vsub.f32 %v2426_v33, %v1024_v62  ;;  %v1028_v9 = vsub.f32 %v2427_v27, %v1024_v62  ;;  %v1418_v11 = vmul.f32 %v2267_v51, %v1407_v0  ;;  %v1408_v12 = vmax.f32 %v1404_v1, 0.0  ;;  %v2598_v1 = vld [vmem:[%s3409_s16] sm:$0xff]  }
 0x6a1   :  { %v1025_v7 = vsub.f32 %v992_v22, %v1015_v2  ;;  %v1026_v8 = vsub.f32 %v995_v28, %v1015_v2  ;;  %v1431_v39 = vadd.f32 %v2268_v63, %v1420_v4  ;;  %v1421_v13 = vmul.f32 %v2267_v51, %v1410_v5  ;;  %v2599_v5 = vld [vmem:[%s3411_s18] sm:$0xff]  }
 0x6a2   :  { %v1033_v35 = vmul.f32 1.442695, %v1027_v6  ;;  %v1035_v14 = vmul.f32 1.442695, %v1028_v9  ;;  %v1419_v15 = vmul.f32 %v2267_v51, %v1408_v12  ;;  %v1429_v19 = vadd.f32 %v2268_v63, %v1418_v11  ;;  %v2601_v6 = vld [vmem:[%s3411_s18 + $0x10] sm:$0xff]   ;;  %v2602_v9 = vld [vmem:[%s3411_s18 + $0x18] sm:$0xff]  }
 0x6a3   :  { %v1029_v16 = vmul.f32 1.442695, %v1025_v7  ;;  %v1031_v17 = vmul.f32 1.442695, %v1026_v8  ;;  %v1432_v18 = vadd.f32 %v2268_v63, %v1421_v13 }
 0x6a4   :  { %2647 = vpow2.f32 %v1033_v35  ;;  %v1430_v40 = vadd.f32 %v2268_v63, %v1419_v15 }
 0x6a5   :  { %2649 = vpow2.f32 %v1035_v14  ;;  %v3143_v26 = vpack.c.bf16 %v1432_v18, %v1431_v39 }
 0x6a6   :  { %2651 = vpow2.f32 %v1029_v16  ;;  %v1433_v33 = vpack.c.bf16 %v1430_v40, %v1429_v19  ;;  %v2269_v19 = vld [vmem:[%s3410_s17] ss:$0 sm:$0xff]  ;;  %s2715_s17 = smov 48  }
 0x6a7   :  { %2653 = vpow2.f32 %v1031_v17 }
 0x6a8   :  { %2469 = vmatpush3.bf16.msra.mxu1 %v1433_v33 }
 0x6a9   :  { %2474 = vmatprep.subr.bf16.mxu1 %v2707_v10 }
 0x6ae   :  { %v2648_v22 = vpop.eup %2647 }
 0x6af   :  { %v2650_v27 = vpop.eup %2649  ;;  %v1046_v28 = vsel %vm384_vm11, %v2648_v22, 0.0 }
 0x6b0   :  { %v2652_v31 = vpop.eup %2651  ;;  %v1047_v32 = vsel %vm384_vm11, %v2650_v27, 0.0 }
 0x6b1   :  { %v2654_v37 = vpop.eup %2653  ;;  %v1048_v38 = vadd.f32 %v1047_v32, %v1046_v28  ;;  %v1037_v36 = vsel %vm384_vm11, %v2652_v31, 0.0 }
 0x6b2   :  { %v1038_v41 = vsel %vm384_vm11, %v2654_v37, 0.0 }
 0x6b3   :  { %v1049_v42 = vrot.slane %v1048_v38, 4  ;;  %v1039_v43 = vadd.f32 %v1038_v41, %v1037_v36 }
 0x6b5   :  { %v1050_v29 = vadd.f32 %v1049_v42, %v1048_v38  ;;  %v1040_v34 = vrot.slane %v1039_v43, 4 }
 0x6b7   :  { %v1051_v44 = vrot.slane %v1050_v29, 2  ;;  %v1041_v45 = vadd.f32 %v1040_v34, %v1039_v43 }
 0x6b9   :  { %v1042_v46 = vrot.slane %v1041_v45, 2  ;;  %v1052_v47 = vadd.f32 %v1051_v44, %v1050_v29 }
 0x6bb   :  { %v1053_v25 = vrot.slane %v1052_v47, 1  ;;  %v1043_v48 = vadd.f32 %v1042_v46, %v1041_v45 }
 0x6bd   :  { %v1054_v49 = vadd.f32 %v1053_v25, %v1052_v47  ;;  %v1044_v51 = vrot.slane %v1043_v48, 1 }
 0x6bf   :  { %2655 = vrcp.f32 %v1054_v49  ;;  %v1045_v53 = vadd.f32 %v1044_v51, %v1043_v48 }
 0x6c1   :  { %2657 = vrcp.f32 %v1045_v53 }
 0x6c9   :  { %v2656_v54 = vpop.eup %2655 }
 0x6ca   :  { %v3150_v55 = vmul.f32 %v2656_v54, %v2648_v22  ;;  %v3152_v57 = vmul.f32 %v2656_v54, %v2650_v27 }
 0x6cb   :  { %v2658_v58 = vpop.eup %2657 }
 0x6cc   :  { %1093 = vxpose.xlu1.b32.start [1/2] (short) (narrow) %v3150_v55, 8  ;;  %v3155_v59 = vmul.f32 %v2658_v58, %v2652_v31  ;;  %v3157_v62 = vmul.f32 %v2658_v58, %v2654_v37 }
 0x6ce   :  { %1061 = vxpose.xlu0.b32.start [1/2] (short) (narrow) %v3155_v59, 8 }
 0x6d0   :  { %1094 = vxpose.xlu1.b32.end [2/2] (short) (narrow) %v3152_v57, 8 }
 0x6d2   :  { %1062 = vxpose.xlu0.b32.end [2/2] (short) (narrow) %v3157_v62, 8 }
 0x74c   :  { %v1109_v2 = vpop.trf.xlu1 }
 0x74d   :  { %v1126_v4 = vpack.c.bf16 %v1109_v2, %v1109_v2 }
 0x74e   :  { %v1077_v63 = vpop.trf.xlu0 }
 0x74f   :  { %v1125_v0 = vpack.c.bf16 %v1077_v63, %v1077_v63 }
 0x751   :  { %2431 = vmatmul.mubr.msk.bf16.vlgmr.msra.gmra.mrb[12].mxu0 %vm505_vm14, %v1125_v0 }
 0x752   :  { %2435 = vmatpush3.bf16.msra.mxu0 %v3077_v30  ;;  %2436 = vmatprep.mubr.msk.bf16.mxu0 %vm2710_vm12, %v2707_v10  ;;  %v2600_v30 = vld [vmem:[%s3411_s18 + $0x8] sm:$0xff]  }
 0x753   :  { %2450 = vmatprep.subr.bf16.mxu0 %v2598_v1 }
 0x759   :  { %2437 = vmatmul.mubr.msk.bf16.vlgmr.msra.gmra.mrb[16].mxu0 %vm505_vm14, %v1126_v4 }
 0x75a   :  { %2451 = vmatpush3.bf16.msra.mxu0 %v2598_v1  ;;  %2452 = vmatprep.mubr.msk.bf16.mxu0 %vm505_vm14, %v1433_v33 }
 0x75b   :  { %2456 = vmatprep.subr.bf16.mxu0 %v2599_v5 }
 0x761   :  { %2453 = vmatmul.mubr.msk.bf16.vlgmr.msra.gmra.mrb[20].mxu0 %vm505_vm14, %v3143_v26 }
 0x762   :  { %2457 = vmatpush3.bf16.msra.mxu0 %v2599_v5 }
 0x763   :  { %2458 = vmatprep.subr.bf16.mxu0 %v2600_v30 }
 0x766   :  { %2459 = vmatpush3.bf16.msra.mxu0 %v2600_v30 }
 0x767   :  { %2460 = vmatprep.subr.bf16.mxu0 %v2601_v6 }
 0x76a   :  { %2461 = vmatpush3.bf16.msra.mxu0 %v2601_v6 }
 0x76b   :  { %2462 = vmatprep.subr.bf16.mxu0 %v2602_v9 }
 0x76e   :  { %2463 = vmatpush3.bf16.msra.mxu0 %v2602_v9 }
 0x824   :  { %v1164_v11 = vpop.f32.mrb[12].mxu0 }
 0x825   :  { %v2432_v12 = vpop.f32.mrb[13].mxu0  ;;  %v3186_v13 = vrot.slane %v1164_v11, %v3056_v50 }
 0x826   :  { %v1167_v7 = vpop.f32.mrb[14].mxu0 }
 0x827   :  { %v2433_v8 = vpop.f32.mrb[15].mxu0 }
 0x82c   :  { %v1207_v39 = vpop.f32.mrb[16].mxu0 }
 0x82d   :  { %v3189_v35 = vrot.slane %v1207_v39, %v3056_v50  ;;  %v2438_v14 = vpop.f32.mrb[17].mxu0 }
 0x82e   :  { %v1210_v15 = vpop.f32.mrb[18].mxu0 }
 0x82f   :  { %v1227_v16 = vcombine.low %v3186_v13, %v3189_v35  ;;  %v1228_v17 = vcombine.high %v3186_v13, %v3189_v35  ;;  %v2439_v18 = vpop.f32.mrb[19].mxu0 }
 0x834   :  { %v2454_v40 = vpop.f32.mrb[20].mxu0 }
 0x835   :  { %v1499_v33 = vadd.f32 %v2454_v40, %v2269_v19  ;;  %v1490_v22 = vpop.f32.mrb[21].mxu0 }
 0x836   :  { %v1491_v27 = vadd.f32 %v2269_v19, %v1490_v22  ;;  %v2455_v28 = vpop.f32.mrb[22].mxu0 }
 0x837   :  { %2659 = vtanh.f32 %v1499_v33  ;;  %v1502_v31 = vadd.f32 %v2455_v28, %v2269_v19  ;;  %v1493_v32 = vpop.f32.mrb[23].mxu0 }
 0x838   :  { %2661 = vtanh.f32 %v1491_v27  ;;  %v1494_v37 = vadd.f32 %v2269_v19, %v1493_v32 }
 0x839   :  { %2663 = vtanh.f32 %v1502_v31 }
 0x83a   :  { %2665 = vtanh.f32 %v1494_v37 }
 0x841   :  { %v2660_v38 = vpop.eup %2659 }
 0x842   :  { %v2662_v36 = vpop.eup %2661 }
 0x843   :  { %v2664_v41 = vpop.eup %2663 }
 0x844   :  { %v2666_v42 = vpop.eup %2665  ;;  %v1510_v43 = vpack.c.bf16 %v2664_v41, %v2660_v38 }
 0x845   :  { %v1509_v29 = vpack.c.bf16 %v2666_v42, %v2662_v36 }
 0x847   :  { %2464 = vmatprep.mubr.msk.bf16.mxu0 %vm328_vm10, %v1509_v29 }
 0x848   :  { %2465 = vmatmul.mubr.msk.bf16.vlgmr.msra.gmra.mrb[24].mxu0 %vm328_vm10, %v1510_v43 }
 0x91b   :  { %v2466_v34 = vpop.f32.mrb[24].mxu0 }
 0x91c   :  { %v1583_v44 = vpop.f32.mrb[25].mxu0  ;;  %v1607_v46 = vsel %vm384_vm11, %v2466_v34, -inf }
 0x91d   :  { %v2467_v45 = vpop.f32.mrb[26].mxu0  ;;  %v1598_v48 = vsel %vm384_vm11, %v1583_v44, -inf }
 0x91e   :  { %v1608_v47 = vsel %vm384_vm11, %v2467_v45, -inf  ;;  %v1586_v25 = vpop.f32.mrb[27].mxu0 }
 0x91f   :  { %v1609_v49 = vmax.f32 %v1607_v46, %v1608_v47  ;;  %v1599_v51 = vsel %vm384_vm11, %v1586_v25, -inf }
 0x920   :  { %v1600_v53 = vmax.f32 %v1598_v48, %v1599_v51 }
 0x921   :  { %v1610_v54 = vrot.slane %v1609_v49, 4 }
 0x922   :  { %v1601_v58 = vrot.slane %v1600_v53, 4 }
 0x923   :  { %v1611_v63 = vmax.f32 %v1609_v49, %v1610_v54 }
 0x924   :  { %v1602_v0 = vmax.f32 %v1600_v53, %v1601_v58 }
 0x925   :  { %v1612_v1 = vrot.slane %v1611_v63, 2 }
 0x926   :  { %v1603_v2 = vrot.slane %v1602_v0, 2 }
 0x927   :  { %v1613_v4 = vmax.f32 %v1611_v63, %v1612_v1 }
 0x928   :  { %v1604_v5 = vmax.f32 %v1602_v0, %v1603_v2 }
 0x929   :  { %v1614_v30 = vrot.slane %v1613_v4, 1 }
 0x92a   :  { %v1605_v6 = vrot.slane %v1604_v5, 1 }
 0x92b   :  { %v1615_v9 = vmax.f32 %v1613_v4, %v1614_v30  ;;  %v2714_v30 = vmov 1934713408  }
 0x92c   :  { %v1606_v11 = vmax.f32 %v1604_v5, %v1605_v6  ;;  %v609_v6 = vunpack.c.l.s4 %v2714_v30 }
 0x92d   :  { %v1618_v12 = vsub.f32 %v2466_v34, %v1615_v9  ;;  %v1619_v7 = vsub.f32 %v2467_v45, %v1615_v9 }
 0x92e   :  { %v1616_v8 = vsub.f32 %v1583_v44, %v1606_v11  ;;  %v1617_v39 = vsub.f32 %v1586_v25, %v1606_v11 }
 0x92f   :  { %v1624_v14 = vmul.f32 1.442695, %v1618_v12  ;;  %v1626_v15 = vmul.f32 1.442695, %v1619_v7 }
 0x930   :  { %v1620_v18 = vmul.f32 1.442695, %v1616_v8  ;;  %v1622_v19 = vmul.f32 1.442695, %v1617_v39  ;;  %v610_v8 = vunpack.c.0.s8 %v609_v6 }
 0x931   :  { %2667 = vpow2.f32 %v1624_v14 }
 0x932   :  { %2669 = vpow2.f32 %v1626_v15 }
 0x933   :  { %2671 = vpow2.f32 %v1620_v18 }
 0x934   :  { %2673 = vpow2.f32 %v1622_v19 }
 0x93b   :  { %v2668_v40 = vpop.eup %2667 }
 0x93c   :  { %v2670_v33 = vpop.eup %2669  ;;  %v1637_v22 = vsel %vm384_vm11, %v2668_v40, 0.0 }
 0x93d   :  { %v2672_v27 = vpop.eup %2671  ;;  %v1638_v28 = vsel %vm384_vm11, %v2670_v33, 0.0 }
 0x93e   :  { %v2674_v31 = vpop.eup %2673  ;;  %v1639_v32 = vadd.f32 %v1638_v28, %v1637_v22  ;;  %v1628_v37 = vsel %vm384_vm11, %v2672_v27, 0.0 }
 0x93f   :  { %v1629_v38 = vsel %vm384_vm11, %v2674_v31, 0.0 }
 0x940   :  { %v1640_v36 = vrot.slane %v1639_v32, 4  ;;  %v1630_v41 = vadd.f32 %v1629_v38, %v1628_v37 }
 0x942   :  { %v1641_v42 = vadd.f32 %v1640_v36, %v1639_v32  ;;  %v1631_v43 = vrot.slane %v1630_v41, 4 }
 0x944   :  { %v1632_v29 = vadd.f32 %v1631_v43, %v1630_v41  ;;  %v1642_v34 = vrot.slane %v1641_v42, 2  ;;  %v2716_v43 = vmov 0  }
 0x945   :  { %1999 = vmatprep.subr.bf16.mxu0 %v2716_v43 }
 0x946   :  { %v1633_v44 = vrot.slane %v1632_v29, 2  ;;  %v1643_v45 = vadd.f32 %v1642_v34, %v1641_v42  ;;  %v2603_v42 = vld [vmem:[%s3412_s19] sm:$0xff]   ;;  %v2608_v34 = vld [vmem:[%s3412_s19 + $0x28] sm:$0xff]  }
 0x947   :  { %2000 = vmatpush1.bf16.msra.mxu0 %v2603_v42 }
 0x948   :  { %v1634_v46 = vadd.f32 %v1633_v44, %v1632_v29  ;;  %v1644_v47 = vrot.slane %v1643_v45, 1  ;;  %2001 = vmatprep.subr.bf16.mxu0 %v2716_v43  ;;  %v2609_v44 = vld [vmem:[%s3412_s19 + $0x30] sm:$0xff]  }
 0x94a   :  { %v1635_v25 = vrot.slane %v1634_v46, 1  ;;  %v1645_v48 = vadd.f32 %v1644_v47, %v1643_v45  ;;  %v2610_v45 = vld [vmem:[%s3412_s19 + $0x38] sm:$0xff]   ;;  %v2612_v47 = vld [vmem:[%s3412_s19 + $0x48] sm:$0xff]  }
 0x94c   :  { %v1636_v49 = vadd.f32 %v1635_v25, %v1634_v46  ;;  %2675 = vrcp.f32 %v1645_v48  ;;  %v2611_v46 = vld [vmem:[%s3412_s19 + $0x40] sm:$0xff]  }
 0x94e   :  { %2677 = vrcp.f32 %v1636_v49 }
 0x956   :  { %v2676_v51 = vpop.eup %2675 }
 0x957   :  { %v3208_v53 = vmul.f32 %v2676_v51, %v2668_v40  ;;  %v3210_v54 = vmul.f32 %v2676_v51, %v2670_v33 }
 0x958   :  { %v2678_v58 = vpop.eup %2677 }
 0x959   :  { %v3212_v63 = vmul.f32 %v2678_v58, %v2672_v27  ;;  %v3214_v0 = vmul.f32 %v2678_v58, %v2674_v31 }
 0x95b   :  { %1652 = vxpose.xlu0.b32.start [1/2] (short) (narrow) %v3212_v63, 8 }
 0x95f   :  { %1653 = vxpose.xlu0.b32.end [2/2] (short) (narrow) %v3214_v0, 8 }
 0x963   :  { %1684 = vxpose.xlu0.b32.start [1/2] (short) (narrow) %v3208_v53, 8 }
 0x967   :  { %1685 = vxpose.xlu0.b32.end [2/2] (short) (narrow) %v3210_v54, 8 }
 0x9db   :  { %v1668_v1 = vpop.trf.xlu0 }
 0x9dc   :  { %v1716_v2 = vpack.c.bf16 %v1668_v1, %v1668_v1 }
 0x9de   :  { %2471 = vmatmul.mubr.msk.bf16.vlgmr.msra.gmra.mrb[24].mxu1 %vm505_vm14, %v1716_v2 }
 0x9df   :  { %2475 = vmatpush3.bf16.msra.mxu1 %v3143_v26  ;;  %2476 = vmatprep.mubr.msk.bf16.mxu1 %vm2710_vm12, %v2707_v10  ;;  %v613_v26 = vsub.s32 %v610_v8, %v2866_v3  ;;  %v2613_v8 = vld [vmem:[%s3414_s21] sm:$0xff]  }
 0x9e0   :  { %2480 = vmatprep.subr.bf16.mxu1 %v2707_v10 }
 0x9e1   :  { %v3234_v19 = vrot.slane %v1227_v16, %v613_v26  ;;  %v1242_v33 = vrot.slane %v1228_v17, %v613_v26  ;;  %v3249_v35 = vrot.slane %v606_v60, %v613_v26  ;;  %v621_v41 = vrot.slane %v607_v61, %v613_v26  ;;  %v2604_v60 = vld [vmem:[%s3412_s19 + $0x8] sm:$0xff]   ;;  %v2607_v61 = vld [vmem:[%s3412_s19 + $0x20] sm:$0xff]   ;;  %s2717_s19 = smov 96  }
 0x9e2   :  { %2002 = vmatpush1.bf16.msra.mxu0 %v2604_v60 }
 0x9e3   :  { %v1700_v4 = vpop.trf.xlu0  ;;  %v1243_v32 = vcombine.high %v3234_v19, %v2707_v10  ;;  %v1244_v38 = vcombine.high %v1242_v33, %v2707_v10  ;;  %v622_v17 = vcombine.high %v3249_v35, %v2707_v10  ;;  %v623_v29 = vcombine.high %v621_v41, %v2707_v10  ;;  %2003 = vmatprep.subr.bf16.mxu0 %v2716_v43 }
 0x9e4   :  { %v1717_v5 = vpack.c.bf16 %v1700_v4, %v1700_v4 }
 0x9e6   :  { %2477 = vmatmul.mubr.msk.bf16.vlgmr.msra.gmra.mrb[28].mxu1 %vm505_vm14, %v1717_v5  ;;  %2004 = vmatpush1.bf16.msra.mxu0 %v2605_v52 }
 0x9e7   :  { %2488 = vmatprep.mubr.msk.bf16.mxu1 %vm2710_vm12, %v2707_v10  ;;  %2005 = vmatprep.subr.bf16.mxu0 %v2716_v43 }
 0x9e8   :  { %2481 = vmatpush3.bf16.msra.mxu1 %v2613_v8 }
 0x9e9   :  { %2482 = vmatprep.subr.bf16.mxu1 %v2707_v10 }
 0x9ea   :  { %2006 = vmatpush1.bf16.msra.mxu0 %v2606_v56  ;;  %v2618_v56 = vld [vmem:[%s3416_s23 + $0x8] sm:$0xff]  }
 0x9eb   :  { %2007 = vmatprep.subr.bf16.mxu0 %v2716_v43 }
 0x9ee   :  { %2008 = vmatpush1.bf16.msra.mxu0 %v2607_v61  ;;  %v2293_v61 = vld [vmem:[%s3415_s22] ss:$0 sm:$0xff] }
 0x9ef   :  { %2009 = vmatprep.subr.bf16.mxu0 %v2716_v43 }
 0x9f2   :  { %2010 = vmatpush1.bf16.msra.mxu0 %v2608_v34 }
 0x9f3   :  { %2011 = vmatprep.subr.bf16.mxu0 %v2716_v43 }
 0x9f6   :  { %2012 = vmatpush1.bf16.msra.mxu0 %v2609_v44 }
 0x9f7   :  { %2013 = vmatprep.subr.bf16.mxu0 %v2716_v43 }
 0x9fa   :  { %2014 = vmatpush1.bf16.msra.mxu0 %v2610_v45 }
 0x9fb   :  { %2015 = vmatprep.subr.bf16.mxu0 %v2716_v43 }
 0x9fe   :  { %2016 = vmatpush1.bf16.msra.mxu0 %v2611_v46 }
 0x9ff   :  { %2017 = vmatprep.subr.bf16.mxu0 %v2716_v43 }
 0xa02   :  { %2018 = vmatpush1.bf16.msra.mxu0 %v2612_v47 }
 0xab1   :  { %v1755_v9 = vpop.f32.mrb[24].mxu1 }
 0xab2   :  { %v2472_v11 = vpop.f32.mrb[25].mxu1  ;;  %v1810_v14 = vrot.slane %v1755_v9, %v3056_v50 }
 0xab3   :  { %v1758_v12 = vpop.f32.mrb[26].mxu1 }
 0xab4   :  { %v2473_v7 = vpop.f32.mrb[27].mxu1 }
 0xab9   :  { %v1798_v39 = vpop.f32.mrb[28].mxu1 }
 0xaba   :  { %v1817_v15 = vrot.slane %v1798_v39, %v3056_v50  ;;  %v2478_v18 = vpop.f32.mrb[29].mxu1 }
 0xabb   :  { %v1801_v40 = vpop.f32.mrb[30].mxu1 }
 0xabc   :  { %v1818_v22 = vcombine.low %v1810_v14, %v1817_v15  ;;  %v1819_v27 = vcombine.high %v1810_v14, %v1817_v15  ;;  %v2479_v28 = vpop.f32.mrb[31].mxu1 }
 0xabe   :  { %v1826_v3 = vrot.slane %v1818_v22, %v613_v26  ;;  %v1833_v31 = vrot.slane %v1819_v27, %v613_v26  ;;  %v2614_v26 = vld [vmem:[%s3414_s21 + $0x8] sm:$0xff]  }
 0xabf   :  { %2483 = vmatpush3.bf16.msra.mxu1 %v2614_v26 }
 0xac0   :  { %v2567_v50 = vpack.i.bf16 %v1833_v31, %v1242_v33  ;;  %v1834_v37 = vcombine.high %v1826_v3, %v2707_v10  ;;  %v1835_v16 = vcombine.high %v1833_v31, %v2707_v10  ;;  %2484 = vmatprep.subr.bf16.mxu1 %v2707_v10 }
 0xac2   :  { %2568 = vrot.lane.b32.xlu0 %v2567_v50, %s2712_s3  ;;  %v2572_v36 = vpack.i.bf16 %v1834_v37, %v1243_v32  ;;  %v2577_v13 = vpack.i.bf16 %v1835_v16, %v1244_v38 }
 0xac4   :  { %2573 = vrot.lane.b32.xlu1 %v2572_v36, %s2709_s11 }
 0xac8   :  { %2578 = vrot.lane.b32.xlu1 %v2577_v13, %s2715_s17  ;;  %v2281_v13 = vld [vmem:[%s3413_s20] ss:$0 sm:$0xff] }
 0xacc   :  { %625 = vrot.lane.b32.xlu1 %v622_v17, %s2708_s6 }
 0xad0   :  { %629 = vrot.lane.b32.xlu1 %v621_v41, %s2709_s11 }
 0xad4   :  { %633 = vrot.lane.b32.xlu1 %v623_v29, %s2711_s2  ;;  %v2617_v29 = vld [vmem:[%s3416_s23] sm:$0xff]  }
 0xb34   :  { %v2569_v48 = vpop.permute.xlu0 %2568 }
 0xb35   :  { %v2571_v2 = vunpack.i.h.bf16 %v2569_v48  ;;  %v2570_v4 = vunpack.i.l.bf16 %v2569_v48 }
 0xb36   :  { %v2574_v25 = vpop.permute.xlu1 %2573 }
 0xb37   :  { %v2576_v49 = vunpack.i.h.bf16 %v2574_v25  ;;  %v2575_v51 = vunpack.i.l.bf16 %v2574_v25 }
 0xb39   :  { %v1848_v58 = vsel %vm505_vm14, %v1826_v3, %v2576_v49  ;;  %v1257_v1 = vsel %vm505_vm14, %v3234_v19, %v2575_v51 }
 0xb3a   :  { %v2579_v5 = vpop.permute.xlu1 %2578  ;;  %v1849_v9 = vsel %vm1258_vm0, %v1848_v58, %v2571_v2  ;;  %v1259_v11 = vsel %vm1258_vm0, %v1257_v1, %v2570_v4 }
 0xb3b   :  { %v2581_v30 = vunpack.i.h.bf16 %v2579_v5  ;;  %v2580_v6 = vunpack.i.l.bf16 %v2579_v5 }
 0xb3d   :  { %v1850_v12 = vsel %vm1260_vm2, %v1849_v9, %v2581_v30  ;;  %v1261_v7 = vsel %vm1260_vm2, %v1259_v11, %v2580_v6 }
 0xb3e   :  { %1901 = vrot.lane.b32.xlu1 %v1850_v12, %s2717_s19  ;;  %1897 = vrot.lane.b32.xlu0 %v1261_v7, %s2712_s3  ;;  %s2719_s19 = smov [#allocation2]  }
 0xb42   :  { %1857 = vrot.lane.b32.xlu1 %v3157_v62, %s2718_s5  ;;  %1855 = vrot.lane.b32.xlu0 %v3155_v59, %s2718_s5  ;;  %v626_v59 = vpop.permute.xlu1 %625 }
 0xb46   :  { %1861 = vrot.lane.b32.xlu1 %v3152_v57, %s2718_s5  ;;  %1859 = vrot.lane.b32.xlu0 %v3150_v55, %s2718_s5  ;;  %v630_v62 = vpop.permute.xlu1 %629  ;;  %v636_v55 = vsel %vm230_vm8, %v3249_v35, %v626_v59  ;;  %s2209_s5 = sshll.u32 %s2719_s19, 4  ;;  %s2210_s5 = int_to_ptr.vmem [resolvable:$true] %s2209_s5 }
 0xb47   :  { %v637_v39 = vsel %vm505_vm14, %v636_v55, %v630_v62  ;;  %s2683_s23 = scalar_lea.vmem %s2210_s5, 32  ;;  %p2688_p1 = scmp.lt.s32.totalorder %s2210_s5, %s2210_s5 }
 0xb48   :  { %p2684_p0 = scmp.ne.s32.totalorder %s2210_s5, %s2683_s23  ;;  %p2689_p2 = scmp.lt.s32.totalorder %s2683_s23, %s2683_s23 }
 0xb4a   :  { %1873 = vrot.lane.b32.xlu1 %v3214_v0, %s2708_s6  ;;  %1871 = vrot.lane.b32.xlu0 %v3212_v63, %s2708_s6  ;;  %v634_v57 = vpop.permute.xlu1 %633  ;;  %p2690_p3 = por %p2689_p2, %p2688_p1 }
 0xb4b   :  { %v639_v0 = vsel %vm638_vm15, %v637_v39, %v634_v57 }
 0xb4c   :  { %p2691_p4 = pnand %p2690_p3, %p2684_p0 }
 0xb4e   :  { %1877 = vrot.lane.b32.xlu1 %v3210_v54, %s2708_s6  ;;  %1875 = vrot.lane.b32.xlu0 %v3208_v53, %s2708_s6 }
 0xbb0   :  { %v1902_v14 = vpop.permute.xlu1 %1901  ;;  %v1898_v15 = vpop.permute.xlu0 %1897 }
 0xbb1   :  { %v1908_v63 = vpack.c.bf16 %v1902_v14, %v1902_v14  ;;  %v1904_v18 = vsel %vm1258_vm0, %v639_v0, %v1898_v15 }
 0xbb2   :  { %v1906_v54 = vsel %vm1905_vm3, %v1904_v18, %v1902_v14 }
 0xbb3   :  { %v1907_v19 = vpack.c.bf16 %v1906_v54, %v1906_v54  ;;  %2292 = vmatprep.mubr.msk.bf16.mxu0 %vm1258_vm0, %v1908_v63 }
 0xbb4   :  { %v1858_v53 = vpop.permute.xlu1 %1857  ;;  %v1856_v40 = vpop.permute.xlu0 %1855 }
 0xbb5   :  { %2032 = vmatmul.mubr.bf16.vlgmr.msra.gmra.mrb[28].mxu0 %v1907_v19  ;;  %v1884_v27 = vsel %vm384_vm11, %v2968_v24, %v1858_v53  ;;  %v1883_v28 = vsel %vm384_vm11, %v2966_v23, %v1856_v40 }
 0xbb8   :  { %v1862_v33 = vpop.permute.xlu1 %1861  ;;  %v1860_v22 = vpop.permute.xlu0 %1859 }
 0xbb9   :  { %v1886_v24 = vsel %vm384_vm11, %v2963_v21, %v1862_v33  ;;  %v1885_v23 = vsel %vm384_vm11, %v2961_v20, %v1860_v22  ;;  %v2615_v20 = vld [vmem:[%s3414_s21 + $0x10] sm:$0xff]   ;;  %v2616_v21 = vld [vmem:[%s3414_s21 + $0x18] sm:$0xff]  }
 0xbba   :  { %2485 = vmatpush3.bf16.msra.mxu1 %v2615_v20 }
 0xbbb   :  { %2486 = vmatprep.subr.bf16.mxu1 %v2707_v10 }
 0xbbc   :  { %v1874_v3 = vpop.permute.xlu1 %1873  ;;  %v1872_v31 = vpop.permute.xlu0 %1871 }
 0xbbd   :  { %v1888_v32 = vsel %vm230_vm8, %v1884_v27, %v1874_v3  ;;  %v1887_v50 = vsel %vm230_vm8, %v1883_v28, %v1872_v31 }
 0xbbe   :  { %1893 = vst.msk [vmem:[%s3418_s25 + $0x8] sm:$0xff] %vm1891_vm4, %v1888_v32  ;;  %1892 = vst.msk [vmem:[%s3418_s25] sm:$0xff] %vm1891_vm4, %v1887_v50  ;;  %2487 = vmatpush3.bf16.msra.mxu1 %v2616_v21 }
 0xbbf   :  { %2492 = vmatprep.subr.bf16.mxu1 %v2707_v10 }
 0xbc0   :  { %v1878_v37 = vpop.permute.xlu1 %1877  ;;  %v1876_v38 = vpop.permute.xlu0 %1875 }
 0xbc1   :  { %v1890_v16 = vsel %vm230_vm8, %v1886_v24, %v1878_v37  ;;  %v1889_v36 = vsel %vm230_vm8, %v1885_v23, %v1876_v38 }
 0xbc2   :  { %1895 = vst.msk [vmem:[%s3418_s25 + $0x18] sm:$0xff] %vm1891_vm4, %v1890_v16  ;;  %1894 = vst.msk [vmem:[%s3418_s25 + $0x10] sm:$0xff] %vm1891_vm4, %v1889_v36 }
 0xc88   :  { %v2033_v35 = vpop.f32.mrb[28].mxu0 }
 0xc89   :  { %v2034_v17 = vadd.f32 %v2281_v13, %v2033_v35  ;;  %v2035_v41 = vpop.f32.mrb[29].mxu0 }
 0xc8a   :  { %v2036_v42 = vpop.f32.mrb[30].mxu0 }
 0xc8b   :  { %v2039_v43 = vmax.f32 %v2034_v17, 0.0  ;;  %v2037_v60 = vpop.f32.mrb[31].mxu0 }
 0xc8d   :  { %v2040_v52 = vpack.c.bf16 %v2039_v43, %v2039_v43 }
 0xc8f   :  { %2489 = vmatmul.mubr.msk.bf16.vlgmr.msra.gmra.mrb[32].mxu1 %vm328_vm10, %v2040_v52 }
 0xc90   :  { %2493 = vmatpush3.bf16.msra.mxu1 %v2617_v29  ;;  %2496 = vmatprep.mubr.msk.bf16.mxu1 %vm2710_vm12, %v2707_v10 }
 0xc91   :  { %2494 = vmatprep.subr.bf16.mxu1 %v2707_v10 }
 0xc94   :  { %2495 = vmatpush3.bf16.msra.mxu1 %v2618_v56 }
 0xd62   :  { %v2117_v34 = vpop.f32.mrb[32].mxu1 }
 0xd63   :  { %v2118_v44 = vadd.f32 %v2293_v61, %v2117_v34  ;;  %v2490_v45 = vpop.f32.mrb[33].mxu1 }
 0xd64   :  { %v2120_v46 = vpop.f32.mrb[34].mxu1 }
 0xd65   :  { %v2123_v47 = vmax.f32 %v2118_v44, 0.0  ;;  %v2491_v25 = vpop.f32.mrb[35].mxu1 }
 0xd67   :  { %v2126_v48 = vpack.c.bf16 %v2123_v47, %v2123_v47  ;;  %2125 = vst.msk [vmem:[#allocation2] sm:$0x3] %vm2124_vm5, %v2123_v47 }
 0xd69   :  { %2497 = vmatmul.mubr.msk.bf16.vlgmr.msra.gmra.mrb[36].mxu1 %vm1258_vm0, %v2126_v48 }
 0xd6a   :  { %2694 = shalt.err (!%p2691_p4)
}
 0xd6b   :  { %s2695_s0 = scalar_lea.hbm %s3419_s26, 32 }
 0xd6c   :  { %p2696_p5 = scmp.ne.s32.totalorder %s3419_s26, %s2695_s0  ;;  %p2699_p6 = scmp.lt.u32.totalorder %s2695_s0, %s3419_s26 }
 0xd6e   :  { %p2701_p7 = pnand %p2699_p6, %p2696_p5 }
 0xd70   :  { %2704 = shalt.err (!%p2701_p7)
}
 0xd71   :  { %2212 = dma.vmem_to_hbm [thread:$0]  %s2210_s5, 32, %s3419_s26, [#allocation3]   ;;  %v2299_v10 = vld [vmem:[%s3417_s24] ss:$0 sm:$0xff]  ;;  %vm2199_vm6 = vcmask 91136  }
 0xe3c   :  { %v2187_v49 = vpop.f32.mrb[36].mxu1 }
 0xe3d   :  { %v2188_v51 = vadd.f32 %v2299_v10, %v2187_v49  ;;  %v2498_v58 = vpop.f32.mrb[37].mxu1 }
 0xe3e   :  { %v2190_v1 = vpop.f32.mrb[38].mxu1 }
 0xe3f   :  { %v2303_v2 = vmul.f32 -1.442695, %v2188_v51  ;;  %v2499_v4 = vpop.f32.mrb[39].mxu1 }
 0xe41   :  { %2679 = vpow2.f32 %v2303_v2 }
 0xe4b   :  { %v2680_v5 = vpop.eup %2679 }
 0xe4c   :  { %v2196_v30 = vadd.f32 1.0, %v2680_v5 }
 0xe4e   :  { %2681 = vrcp.f32 %v2196_v30 }
 0xe58   :  { %v2682_v6 = vpop.eup %2681 }
 0xe59   :  { %2200 = vst.msk [vmem:[%s3420_s27] sm:$0x3] %vm2199_vm6, %v2682_v6 }
 0xe5a   :  { %2705 = dma.done.wait [#allocation3], 32  }
 0xe5b   :  { %2706 = vsyncadd [#allocation3], 4294967264 }
 0xe5c   :  { %2222 = vsyncpa [#allocation3], 1 }

</bundles_post_ra>
